<compile_context>
chip_gen: v7x
topology: tpu7x:2x2x1
jax: 0.10.0
libtpu: 0.0.40
codegen_flags: <defaults>
</compile_context>

<pallas_src>
import functools
import math

import jax
import jax.numpy as jnp
from jax.experimental import pallas as pl
from jax.experimental.pallas import tpu as pltpu

LANE = 128


def _round_up(x, m):
    return (x + m - 1) // m * m


def _attention_kernel(x_ref,
                      w_in_ref, b_in_ref,
                      w_qkv_ref, b_qkv_ref,
                      wo_ref, bo_ref,
                      wfc_ref, bfc_ref,
                      out_ref,
                      *, num_heads, seq_len, tb, dhp):
    nh = num_heads
    S = seq_len
    bf16 = jnp.bfloat16
    f32 = jnp.float32

    # fc_in : bf16 x bf16 -> f32 accumulate
    x = x_ref[...].astype(bf16)                                            # (R, Din_p)
    h = jnp.dot(x, w_in_ref[...], preferred_element_type=f32) + b_in_ref[...]   # (R, Hp) f32

    # fused QKV in-projection (head-lane-padded layout, q-scale folded into the weights)
    qkv = jnp.dot(h.astype(bf16), w_qkv_ref[...],
                  preferred_element_type=f32) + b_qkv_ref[...]             # (R, 3*nh*dhp) f32

    # Per-(batch, head) tiles: each slice is a full 128-lane block (dhp % 128 == 0), so these
    # are lane-aligned views / lane-dense copies -- no dh-wide relayouts.
    def head_block(sel, b, hd):
        c0 = (sel * nh + hd) * dhp
        return qkv[b * S:(b + 1) * S, c0:c0 + dhp]                         # (S, dhp)

    qh = jnp.stack([head_block(0, b, hd) for b in range(tb) for hd in range(nh)])
    kh = jnp.stack([head_block(1, b, hd) for b in range(tb) for hd in range(nh)])
    vh = jnp.stack([head_block(2, b, hd) for b in range(tb) for hd in range(nh)])
    # (tb*nh, S, dhp); padded dh lanes are exactly zero.

    # Batched scaled-dot-product attention over all (batch, head) pairs.
    scores = jnp.einsum('bqd,bkd->bqk', qh.astype(bf16), kh.astype(bf16),
                        preferred_element_type=f32)                        # (tb*nh, S, S) f32
    scores = scores - jnp.max(scores, axis=-1, keepdims=True)
    p = jnp.exp(scores)                                                    # f32 softmax numerator
    l = jnp.sum(p, axis=-1, keepdims=True)                                 # (tb*nh, S, 1)
    o = jnp.einsum('bqk,bkd->bqd', p.astype(bf16), vh.astype(bf16),
                   preferred_element_type=f32)                             # (tb*nh, S, dhp)
    o = o * pl.reciprocal(l, approx=True)                                  # normalize post-PV (EUP)

    # Re-assemble (R, nh*dhp): heads back onto lanes (128-lane blocks), batches back onto rows.
    attn = jnp.concatenate(
        [jnp.concatenate([o[b * nh + hd] for hd in range(nh)], axis=-1)    # (S, nh*dhp)
         for b in range(tb)], axis=0)                                      # (R, nh*dhp)

    # out_proj of MultiheadAttention (wo rows are zero on the padded dh lanes)
    ao = jnp.dot(attn.astype(bf16), wo_ref[...],
                 preferred_element_type=f32) + bo_ref[...]                 # (R, Hp) f32

    # final fc -> lane-dense (R, CKp) output slab
    y = jnp.dot(ao.astype(bf16), wfc_ref[...],
                preferred_element_type=f32) + bfc_ref[...]                 # (R, CKp) f32
    out_ref[...] = y.astype(out_ref.dtype)


def prepare_params(params, *, num_heads):
    """One-time packing: pad to 128 lanes, fuse QKV head-major (dh padded to 128 per head),
    fold the query scale, cast matmul weights to bf16.  Call once, reuse every forward."""
    Din, H = params["w_in"].shape
    assert H % num_heads == 0
    dh = H // num_heads
    CK = params["wfc"].shape[1]
    nh = num_heads

    Din_p = _round_up(Din, LANE)
    Hp = _round_up(H, LANE)
    dhp = _round_up(dh, LANE)
    CKp = _round_up(CK, LANE)
    scale = 1.0 / math.sqrt(dh)
    f32, bf16 = jnp.float32, jnp.bfloat16

    w_in = jnp.zeros((Din_p, Hp), f32).at[:Din, :H].set(params["w_in"]).astype(bf16)
    b_in = jnp.zeros((1, Hp), f32).at[:, :H].set(params["b_in"])

    # fused QKV: columns laid out [q heads | k heads | v heads], each head gets a 128-lane block
    w_qkv = jnp.zeros((Hp, 3 * nh * dhp), f32)
    b_qkv = jnp.zeros((1, 3 * nh * dhp), f32)
    srcs = [(params["wq"] * scale, params["bq"] * scale),
            (params["wk"], params["bk"]),
            (params["wv"], params["bv"])]
    for sel, (w, b) in enumerate(srcs):
        for hd in range(nh):
            c0 = (sel * nh + hd) * dhp
            w_qkv = w_qkv.at[:H, c0:c0 + dh].set(w[:, hd * dh:(hd + 1) * dh])
            b_qkv = b_qkv.at[:, c0:c0 + dh].set(b[:, hd * dh:(hd + 1) * dh])
    w_qkv = w_qkv.astype(bf16)

    # out_proj weight: rows follow the head-lane-padded layout (zero rows on padded dh lanes)
    wo = jnp.zeros((nh * dhp, Hp), f32)
    for hd in range(nh):
        wo = wo.at[hd * dhp:hd * dhp + dh, :H].set(params["wo"][hd * dh:(hd + 1) * dh, :])
    wo = wo.astype(bf16)
    bo = jnp.zeros((1, Hp), f32).at[:, :H].set(params["bo"])

    wfc = jnp.zeros((Hp, CKp), f32).at[:H, :CK].set(params["wfc"]).astype(bf16)
    bfc = jnp.zeros((1, CKp), f32).at[:, :CK].set(params["bfc"])

    packed = dict(w_in=w_in, b_in=b_in, w_qkv=w_qkv, b_qkv=b_qkv,
                  wo=wo, bo=bo, wfc=wfc, bfc=bfc)
    meta = dict(num_heads=nh, dh=dh, dhp=dhp, H=H, Hp=Hp,
                Din=Din, Din_p=Din_p, CK=CK, CKp=CKp)
    return packed, meta


def attention_forward(x, packed, meta, *, num_channels, num_classes):
    B, S, Din = x.shape
    nh, dhp = meta["num_heads"], meta["dhp"]
    Din_p, Hp = meta["Din_p"], meta["Hp"]
    CK, CKp = meta["CK"], meta["CKp"]
    assert CK == num_channels * num_classes
    f32 = jnp.float32

    # pad activations to lane-dense rows and flatten (batch, seq)
    x2 = jnp.zeros((B, S, Din_p), f32).at[:, :, :Din].set(x).reshape(B * S, Din_p)

    # --- row packing: target ~256 MXU rows per step, keep grid >= 2 steps, keep blocks legal ---
    row_target = 256
    tb = max(1, min(B, row_target // max(S, 1)))
    while B % tb:
        tb -= 1
    if B >= 2 and B // tb < 2:            # v7x: give both TensorCores a grid step
        tb = max(1, tb // 2)
        while B % tb:
            tb -= 1
    if tb != B and (tb * S) % 8:          # (8,128) rule: row block must be sublane-aligned
        tb = B                            # (whole-array block is always legal)
    r_blk = tb * S
    grid = B // tb

    # --- explicit VMEM budget from the working set (weights single-buffered, I/O double) ---
    weights = (packed["w_in"], packed["b_in"], packed["w_qkv"], packed["b_qkv"],
               packed["wo"], packed["bo"], packed["wfc"], packed["bfc"])
    weight_bytes = sum(int(w.size) * w.dtype.itemsize for w in weights)
    io_bytes = 2 * r_blk * (Din_p + CKp) * 4
    bh = tb * nh
    inter_bytes = 4 * (r_blk * (Hp + 3 * nh * dhp)        # h, qkv
                       + 4 * bh * S * dhp                 # q/k/v stacks + o
                       + 2 * bh * S * S                   # scores, p
                       + r_blk * (nh * dhp + Hp + CKp))   # attn, ao, y
    vmem_limit = int(min(112 * 2 ** 20,
                         max(32 * 2 ** 20, 2 * (weight_bytes + io_bytes + inter_bytes))))

    vmem_full = pl.BlockSpec(memory_space=pltpu.MemorySpace.VMEM)  # whole array, single copy
    kernel = functools.partial(_attention_kernel, num_heads=nh, seq_len=S, tb=tb, dhp=dhp)

    out2 = pl.pallas_call(
        kernel,
        out_shape=jax.ShapeDtypeStruct((B * S, CKp), f32),
        grid_spec=pltpu.PrefetchScalarGridSpec(
            num_scalar_prefetch=0,
            grid=(grid,),
            in_specs=[
                pl.BlockSpec((r_blk, Din_p), lambda i: (i, 0)),   # x rows (pipelined)
                vmem_full, vmem_full,                             # fc_in  w, b
                vmem_full, vmem_full,                             # fused QKV w, b
                vmem_full, vmem_full,                             # out_proj w, b
                vmem_full, vmem_full,                             # fc w, b
            ],
            out_specs=pl.BlockSpec((r_blk, CKp), lambda i: (i, 0)),
        ),
        compiler_params=pltpu.CompilerParams(
            dimension_semantics=("parallel",),
            vmem_limit_bytes=vmem_limit),
    )(x2, *weights)

    # un-pad + view(-1, S, num_channels, num_classes)
    return out2[:, :CK].reshape(B, S, num_channels, num_classes)


def _ref_forward(x, params, *, num_heads, num_channels, num_classes):
    # Pure-JAX f32 reference mirroring PyTorch semantics (for correctness check).
    B, S, Din = x.shape
    H = params["w_in"].shape[1]
    dh = H // num_heads
    h = x @ params["w_in"] + params["b_in"]
    q = h @ params["wq"] + params["bq"]
    k = h @ params["wk"] + params["bk"]
    v = h @ params["wv"] + params["bv"]
    qh = q.reshape(B, S, num_heads, dh).transpose(0, 2, 1, 3) / math.sqrt(dh)
    kh = k.reshape(B, S, num_heads, dh).transpose(0, 2, 1, 3)
    vh = v.reshape(B, S, num_heads, dh).transpose(0, 2, 1, 3)
    scores = jnp.einsum("bhqd,bhkd->bhqk", qh, kh)
    p = jax.nn.softmax(scores, axis=-1)
    o = jnp.einsum("bhqk,bhkd->bhqd", p, vh).transpose(0, 2, 1, 3).reshape(B, S, H)
    o = o @ params["wo"] + params["bo"]
    y = o @ params["wfc"] + params["bfc"]
    return y.reshape(B, S, num_channels, num_classes)


def make_params(key, input_size, hidden_size, num_channels, num_classes):
    ks = jax.random.split(key, 13)
    H = hidden_size
    CK = num_channels * num_classes
    s = 0.05
    return {
        "w_in": jax.random.normal(ks[0], (input_size, H), jnp.float32) * s,
        "b_in": jax.random.normal(ks[1], (1, H), jnp.float32) * s,
        "wq":   jax.random.normal(ks[2], (H, H), jnp.float32) * s,
        "wk":   jax.random.normal(ks[3], (H, H), jnp.float32) * s,
        "wv":   jax.random.normal(ks[4], (H, H), jnp.float32) * s,
        "bq":   jax.random.normal(ks[5], (1, H), jnp.float32) * s,
        "bk":   jax.random.normal(ks[6], (1, H), jnp.float32) * s,
        "bv":   jax.random.normal(ks[7], (1, H), jnp.float32) * s,
        "wo":   jax.random.normal(ks[8], (H, H), jnp.float32) * s,
        "bo":   jax.random.normal(ks[9], (1, H), jnp.float32) * s,
        "wfc":  jax.random.normal(ks[10], (H, CK), jnp.float32) * s,
        "bfc":  jax.random.normal(ks[11], (1, CK), jnp.float32) * s,
    }


if __name__ == "__main__":
    # Small shapes consistent with the module's forward.
    B, S = 2, 8
    input_size, hidden_size = 16, 32
    num_heads, num_channels, num_classes = 4, 4, 2

    key = jax.random.PRNGKey(0)
    kx, kp = jax.random.split(key)
    x = jax.random.normal(kx, (B, S, input_size), jnp.float32)
    params = make_params(kp, input_size, hidden_size, num_channels, num_classes)

    packed, meta = prepare_params(params, num_heads=num_heads)      # one-time packing
    out = attention_forward(x, packed, meta,
                            num_channels=num_channels, num_classes=num_classes)
    out = jax.block_until_ready(out)

    ref = _ref_forward(x, params, num_heads=num_heads,
                       num_channels=num_channels, num_classes=num_classes)
    assert out.shape == (B, S, num_channels, num_classes)
    # bf16 MXU operands + approx reciprocal in the softmax normalization -> loosened tolerance
    max_err = jnp.max(jnp.abs(out - ref))
    assert jnp.allclose(out, ref, atol=5e-3, rtol=5e-2), f"max abs err {max_err}"

    print("KERNEL_OK")
</pallas_src>

<mosaic_0001>
module attributes {stable_mosaic.version = 11 : i64} {
  func.func @_attention_kernel(%arg0: i32, %arg1: memref<8x128xf32, #tpu.memory_space<vmem>>, %arg2: memref<128x128xbf16, #tpu.memory_space<vmem>>, %arg3: memref<1x128xf32, #tpu.memory_space<vmem>>, %arg4: memref<128x1536xbf16, #tpu.memory_space<vmem>>, %arg5: memref<1x1536xf32, #tpu.memory_space<vmem>>, %arg6: memref<512x128xbf16, #tpu.memory_space<vmem>>, %arg7: memref<1x128xf32, #tpu.memory_space<vmem>>, %arg8: memref<128x128xbf16, #tpu.memory_space<vmem>>, %arg9: memref<1x128xf32, #tpu.memory_space<vmem>>, %arg10: memref<8x128xf32, #tpu.memory_space<vmem>>) attributes {dimension_semantics = [#tpu.dimension_semantics<parallel>], iteration_bounds = array<i64: 2>, scalar_prefetch = 0 : i64, scratch_operands = 0 : i64, tpu.core_type = #tpu.core_type<tc>, window_params = [{transform_indices = @transform_0, window_bounds = array<i64: 8, 128>}, {pipeline_mode = #tpu.pipeline_mode<synchronous>, transform_indices = @transform_1, window_bounds = array<i64: 128, 128>}, {pipeline_mode = #tpu.pipeline_mode<synchronous>, transform_indices = @transform_2, window_bounds = array<i64: 1, 128>}, {pipeline_mode = #tpu.pipeline_mode<synchronous>, transform_indices = @transform_3, window_bounds = array<i64: 128, 1536>}, {pipeline_mode = #tpu.pipeline_mode<synchronous>, transform_indices = @transform_4, window_bounds = array<i64: 1, 1536>}, {pipeline_mode = #tpu.pipeline_mode<synchronous>, transform_indices = @transform_5, window_bounds = array<i64: 512, 128>}, {pipeline_mode = #tpu.pipeline_mode<synchronous>, transform_indices = @transform_6, window_bounds = array<i64: 1, 128>}, {pipeline_mode = #tpu.pipeline_mode<synchronous>, transform_indices = @transform_7, window_bounds = array<i64: 128, 128>}, {pipeline_mode = #tpu.pipeline_mode<synchronous>, transform_indices = @transform_8, window_bounds = array<i64: 1, 128>}, {transform_indices = @transform_9, window_bounds = array<i64: 8, 128>}]} {
    %c0 = arith.constant 0 : index
    %c0_0 = arith.constant 0 : index
    %0 = vector.load %arg1[%c0, %c0_0] : memref<8x128xf32, #tpu.memory_space<vmem>>, vector<8x128xf32>
    %1 = arith.truncf %0 : vector<8x128xf32> to vector<8x128xbf16>
    %c0_1 = arith.constant 0 : index
    %c0_2 = arith.constant 0 : index
    %2 = vector.load %arg2[%c0_1, %c0_2] : memref<128x128xbf16, #tpu.memory_space<vmem>>, vector<128x128xbf16>
    %cst = arith.constant dense<0.000000e+00> : vector<8x128xf32>
    %3 = tpu.matmul %1, %2, %cst {dimension_numbers = #tpu.dot_dimension_numbers<[1], [0], [0], [1], [0, 0, 1, 1], [], []>} : vector<8x128xbf16>, vector<128x128xbf16>, vector<8x128xf32> -> vector<8x128xf32>
    %c0_3 = arith.constant 0 : index
    %c0_4 = arith.constant 0 : index
    %4 = vector.load %arg3[%c0_3, %c0_4] : memref<1x128xf32, #tpu.memory_space<vmem>>, vector<1x128xf32>
    %5 = vector.broadcast %4 : vector<1x128xf32> to vector<8x128xf32>
    %6 = arith.addf %3, %5 : vector<8x128xf32>
    %7 = arith.truncf %6 : vector<8x128xf32> to vector<8x128xbf16>
    %c0_5 = arith.constant 0 : index
    %c0_6 = arith.constant 0 : index
    %8 = vector.load %arg4[%c0_5, %c0_6] : memref<128x1536xbf16, #tpu.memory_space<vmem>>, vector<128x1536xbf16>
    %cst_7 = arith.constant dense<0.000000e+00> : vector<8x1536xf32>
    %9 = tpu.matmul %7, %8, %cst_7 {dimension_numbers = #tpu.dot_dimension_numbers<[1], [0], [0], [1], [0, 0, 1, 1], [], []>} : vector<8x128xbf16>, vector<128x1536xbf16>, vector<8x1536xf32> -> vector<8x1536xf32>
    %c0_8 = arith.constant 0 : index
    %c0_9 = arith.constant 0 : index
    %10 = vector.load %arg5[%c0_8, %c0_9] : memref<1x1536xf32, #tpu.memory_space<vmem>>, vector<1x1536xf32>
    %11 = vector.broadcast %10 : vector<1x1536xf32> to vector<8x1536xf32>
    %12 = arith.addf %9, %11 : vector<8x1536xf32>
    %13 = vector.extract_strided_slice %12 {offsets = [0, 0], sizes = [8, 128], strides = [1, 1]} : vector<8x1536xf32> to vector<8x128xf32>
    %14 = vector.extract_strided_slice %12 {offsets = [0, 128], sizes = [8, 128], strides = [1, 1]} : vector<8x1536xf32> to vector<8x128xf32>
    %15 = vector.extract_strided_slice %12 {offsets = [0, 256], sizes = [8, 128], strides = [1, 1]} : vector<8x1536xf32> to vector<8x128xf32>
    %16 = vector.extract_strided_slice %12 {offsets = [0, 384], sizes = [8, 128], strides = [1, 1]} : vector<8x1536xf32> to vector<8x128xf32>
    %17 = vector.shape_cast %13 : vector<8x128xf32> to vector<1x8x128xf32>
    %18 = vector.shape_cast %14 : vector<8x128xf32> to vector<1x8x128xf32>
    %19 = vector.shape_cast %15 : vector<8x128xf32> to vector<1x8x128xf32>
    %20 = vector.shape_cast %16 : vector<8x128xf32> to vector<1x8x128xf32>
    %21 = tpu.concatenate %17, %18, %19, %20 in 0 : vector<1x8x128xf32>, vector<1x8x128xf32>, vector<1x8x128xf32>, vector<1x8x128xf32> -> vector<4x8x128xf32>
    %22 = vector.extract_strided_slice %12 {offsets = [0, 512], sizes = [8, 128], strides = [1, 1]} : vector<8x1536xf32> to vector<8x128xf32>
    %23 = vector.extract_strided_slice %12 {offsets = [0, 640], sizes = [8, 128], strides = [1, 1]} : vector<8x1536xf32> to vector<8x128xf32>
    %24 = vector.extract_strided_slice %12 {offsets = [0, 768], sizes = [8, 128], strides = [1, 1]} : vector<8x1536xf32> to vector<8x128xf32>
    %25 = vector.extract_strided_slice %12 {offsets = [0, 896], sizes = [8, 128], strides = [1, 1]} : vector<8x1536xf32> to vector<8x128xf32>
    %26 = vector.shape_cast %22 : vector<8x128xf32> to vector<1x8x128xf32>
    %27 = vector.shape_cast %23 : vector<8x128xf32> to vector<1x8x128xf32>
    %28 = vector.shape_cast %24 : vector<8x128xf32> to vector<1x8x128xf32>
    %29 = vector.shape_cast %25 : vector<8x128xf32> to vector<1x8x128xf32>
    %30 = tpu.concatenate %26, %27, %28, %29 in 0 : vector<1x8x128xf32>, vector<1x8x128xf32>, vector<1x8x128xf32>, vector<1x8x128xf32> -> vector<4x8x128xf32>
    %31 = vector.extract_strided_slice %12 {offsets = [0, 1024], sizes = [8, 128], strides = [1, 1]} : vector<8x1536xf32> to vector<8x128xf32>
    %32 = vector.extract_strided_slice %12 {offsets = [0, 1152], sizes = [8, 128], strides = [1, 1]} : vector<8x1536xf32> to vector<8x128xf32>
    %33 = vector.extract_strided_slice %12 {offsets = [0, 1280], sizes = [8, 128], strides = [1, 1]} : vector<8x1536xf32> to vector<8x128xf32>
    %34 = vector.extract_strided_slice %12 {offsets = [0, 1408], sizes = [8, 128], strides = [1, 1]} : vector<8x1536xf32> to vector<8x128xf32>
    %35 = vector.shape_cast %31 : vector<8x128xf32> to vector<1x8x128xf32>
    %36 = vector.shape_cast %32 : vector<8x128xf32> to vector<1x8x128xf32>
    %37 = vector.shape_cast %33 : vector<8x128xf32> to vector<1x8x128xf32>
    %38 = vector.shape_cast %34 : vector<8x128xf32> to vector<1x8x128xf32>
    %39 = tpu.concatenate %35, %36, %37, %38 in 0 : vector<1x8x128xf32>, vector<1x8x128xf32>, vector<1x8x128xf32>, vector<1x8x128xf32> -> vector<4x8x128xf32>
    %40 = arith.truncf %21 : vector<4x8x128xf32> to vector<4x8x128xbf16>
    %41 = arith.truncf %30 : vector<4x8x128xf32> to vector<4x8x128xbf16>
    "tpu.trace_start"() <{level = 10 : i32, message = "bqd,bkd->bqk"}> : () -> ()
    %cst_10 = arith.constant dense<0.000000e+00> : vector<4x8x8xf32>
    %42 = tpu.matmul %40, %41, %cst_10 {dimension_numbers = #tpu.dot_dimension_numbers<[2], [2], [1], [1], [0, 0, 0, 1, 1, 1], [0], [0]>} : vector<4x8x128xbf16>, vector<4x8x128xbf16>, vector<4x8x8xf32> -> vector<4x8x8xf32>
    "tpu.trace_stop"() : () -> ()
    %cst_11 = arith.constant dense<0xFF800000> : vector<4x8xf32>
    %43 = vector.multi_reduction <maximumf>, %42, %cst_11 [2] : vector<4x8x8xf32> to vector<4x8xf32>
    %44 = vector.shape_cast %43 : vector<4x8xf32> to vector<4x8x1xf32>
    %45 = vector.broadcast %44 : vector<4x8x1xf32> to vector<4x8x8xf32>
    %46 = arith.subf %42, %45 : vector<4x8x8xf32>
    %47 = math.exp %46 : vector<4x8x8xf32>
    %cst_12 = arith.constant dense<0.000000e+00> : vector<4x8xf32>
    %48 = vector.multi_reduction <add>, %47, %cst_12 [2] : vector<4x8x8xf32> to vector<4x8xf32>
    %49 = vector.shape_cast %48 : vector<4x8xf32> to vector<4x8x1xf32>
    %50 = arith.truncf %47 : vector<4x8x8xf32> to vector<4x8x8xbf16>
    %51 = arith.truncf %39 : vector<4x8x128xf32> to vector<4x8x128xbf16>
    "tpu.trace_start"() <{level = 10 : i32, message = "bqk,bkd->bqd"}> : () -> ()
    %cst_13 = arith.constant dense<0.000000e+00> : vector<4x8x128xf32>
    %52 = tpu.matmul %50, %51, %cst_13 {dimension_numbers = #tpu.dot_dimension_numbers<[2], [1], [1], [2], [0, 0, 0, 1, 1, 2], [0], [0]>} : vector<4x8x8xbf16>, vector<4x8x128xbf16>, vector<4x8x128xf32> -> vector<4x8x128xf32>
    "tpu.trace_stop"() : () -> ()
    %53 = tpu.reciprocal %49 {approx = true} : vector<4x8x1xf32> -> vector<4x8x1xf32>
    %54 = vector.broadcast %53 : vector<4x8x1xf32> to vector<4x8x128xf32>
    %55 = arith.mulf %52, %54 : vector<4x8x128xf32>
    %56 = vector.extract_strided_slice %55 {offsets = [0, 0, 0], sizes = [1, 8, 128], strides = [1, 1, 1]} : vector<4x8x128xf32> to vector<1x8x128xf32>
    %57 = vector.shape_cast %56 : vector<1x8x128xf32> to vector<8x128xf32>
    %58 = vector.extract_strided_slice %55 {offsets = [1, 0, 0], sizes = [1, 8, 128], strides = [1, 1, 1]} : vector<4x8x128xf32> to vector<1x8x128xf32>
    %59 = vector.shape_cast %58 : vector<1x8x128xf32> to vector<8x128xf32>
    %60 = vector.extract_strided_slice %55 {offsets = [2, 0, 0], sizes = [1, 8, 128], strides = [1, 1, 1]} : vector<4x8x128xf32> to vector<1x8x128xf32>
    %61 = vector.shape_cast %60 : vector<1x8x128xf32> to vector<8x128xf32>
    %62 = vector.extract_strided_slice %55 {offsets = [3, 0, 0], sizes = [1, 8, 128], strides = [1, 1, 1]} : vector<4x8x128xf32> to vector<1x8x128xf32>
    %63 = vector.shape_cast %62 : vector<1x8x128xf32> to vector<8x128xf32>
    %64 = tpu.concatenate %57, %59, %61, %63 in 1 : vector<8x128xf32>, vector<8x128xf32>, vector<8x128xf32>, vector<8x128xf32> -> vector<8x512xf32>
    %65 = arith.truncf %64 : vector<8x512xf32> to vector<8x512xbf16>
    %c0_14 = arith.constant 0 : index
    %c0_15 = arith.constant 0 : index
    %66 = vector.load %arg6[%c0_14, %c0_15] : memref<512x128xbf16, #tpu.memory_space<vmem>>, vector<512x128xbf16>
    %cst_16 = arith.constant dense<0.000000e+00> : vector<8x128xf32>
    %67 = tpu.matmul %65, %66, %cst_16 {dimension_numbers = #tpu.dot_dimension_numbers<[1], [0], [0], [1], [0, 0, 1, 1], [], []>} : vector<8x512xbf16>, vector<512x128xbf16>, vector<8x128xf32> -> vector<8x128xf32>
    %c0_17 = arith.constant 0 : index
    %c0_18 = arith.constant 0 : index
    %68 = vector.load %arg7[%c0_17, %c0_18] : memref<1x128xf32, #tpu.memory_space<vmem>>, vector<1x128xf32>
    %69 = vector.broadcast %68 : vector<1x128xf32> to vector<8x128xf32>
    %70 = arith.addf %67, %69 : vector<8x128xf32>
    %71 = arith.truncf %70 : vector<8x128xf32> to vector<8x128xbf16>
    %c0_19 = arith.constant 0 : index
    %c0_20 = arith.constant 0 : index
    %72 = vector.load %arg8[%c0_19, %c0_20] : memref<128x128xbf16, #tpu.memory_space<vmem>>, vector<128x128xbf16>
    %cst_21 = arith.constant dense<0.000000e+00> : vector<8x128xf32>
    %73 = tpu.matmul %71, %72, %cst_21 {dimension_numbers = #tpu.dot_dimension_numbers<[1], [0], [0], [1], [0, 0, 1, 1], [], []>} : vector<8x128xbf16>, vector<128x128xbf16>, vector<8x128xf32> -> vector<8x128xf32>
    %c0_22 = arith.constant 0 : index
    %c0_23 = arith.constant 0 : index
    %74 = vector.load %arg9[%c0_22, %c0_23] : memref<1x128xf32, #tpu.memory_space<vmem>>, vector<1x128xf32>
    %75 = vector.broadcast %74 : vector<1x128xf32> to vector<8x128xf32>
    %76 = arith.addf %73, %75 : vector<8x128xf32>
    %c0_24 = arith.constant 0 : index
    %c0_25 = arith.constant 0 : index
    %77 = vector.load %arg10[%c0_24, %c0_25] : memref<8x128xf32, #tpu.memory_space<vmem>>, vector<8x128xf32>
    tpu.vector_store %arg10[%c0_24, %c0_25], %76 {strides = array<i32>} : memref<8x128xf32, #tpu.memory_space<vmem>>, vector<8x128xf32>,
    return
  }
  func.func @transform_0(%arg0: i32) -> (i32, i32) {
    %c0_i32 = arith.constant 0 : i32
    %c0_i32_0 = arith.constant 0 : i32
    return %arg0, %c0_i32 : i32, i32
  }
  func.func @transform_1(%arg0: i32) -> (i32, i32) {
    %c0_i32 = arith.constant 0 : i32
    %c0_i32_0 = arith.constant 0 : i32
    %c0_i32_1 = arith.constant 0 : i32
    return %c0_i32, %c0_i32_0 : i32, i32
  }
  func.func @transform_2(%arg0: i32) -> (i32, i32) {
    %c0_i32 = arith.constant 0 : i32
    %c0_i32_0 = arith.constant 0 : i32
    %c0_i32_1 = arith.constant 0 : i32
    return %c0_i32, %c0_i32_0 : i32, i32
  }
  func.func @transform_3(%arg0: i32) -> (i32, i32) {
    %c0_i32 = arith.constant 0 : i32
    %c0_i32_0 = arith.constant 0 : i32
    %c0_i32_1 = arith.constant 0 : i32
    return %c0_i32, %c0_i32_0 : i32, i32
  }
  func.func @transform_4(%arg0: i32) -> (i32, i32) {
    %c0_i32 = arith.constant 0 : i32
    %c0_i32_0 = arith.constant 0 : i32
    %c0_i32_1 = arith.constant 0 : i32
    return %c0_i32, %c0_i32_0 : i32, i32
  }
  func.func @transform_5(%arg0: i32) -> (i32, i32) {
    %c0_i32 = arith.constant 0 : i32
    %c0_i32_0 = arith.constant 0 : i32
    %c0_i32_1 = arith.constant 0 : i32
    return %c0_i32, %c0_i32_0 : i32, i32
  }
  func.func @transform_6(%arg0: i32) -> (i32, i32) {
    %c0_i32 = arith.constant 0 : i32
    %c0_i32_0 = arith.constant 0 : i32
    %c0_i32_1 = arith.constant 0 : i32
    return %c0_i32, %c0_i32_0 : i32, i32
  }
  func.func @transform_7(%arg0: i32) -> (i32, i32) {
    %c0_i32 = arith.constant 0 : i32
    %c0_i32_0 = arith.constant 0 : i32
    %c0_i32_1 = arith.constant 0 : i32
    return %c0_i32, %c0_i32_0 : i32, i32
  }
  func.func @transform_8(%arg0: i32) -> (i32, i32) {
    %c0_i32 = arith.constant 0 : i32
    %c0_i32_0 = arith.constant 0 : i32
    %c0_i32_1 = arith.constant 0 : i32
    return %c0_i32, %c0_i32_0 : i32, i32
  }
  func.func @transform_9(%arg0: i32) -> (i32, i32) {
    %c0_i32 = arith.constant 0 : i32
    %c0_i32_0 = arith.constant 0 : i32
    return %arg0, %c0_i32 : i32, i32
  }
}

</mosaic_0001>

<bundles_post_ra>
// kernel: tpu_custom_call.1
= control target key start
LH: loop header
LB: loop body
LE: loop exit
PB: predicated region body
PF: predicated region fallthrough
CT: control target
= control target key end

     0   :  { %s3722_s0 = inlined_call_operand.hbm [shape: f32[16,128], index: 0, kind: input, shape index: {}]   ;;  %s3723_s1 = inlined_call_operand.hbm [shape: bf16[128,128], index: 1, kind: input, shape index: {}]   ;;  %s3724_s2 = inlined_call_operand.vmem [shape: f32[1,128], index: 2, kind: input, shape index: {}]   ;;  %s3725_s3 = inlined_call_operand.hbm [shape: bf16[128,1536], index: 3, kind: input, shape index: {}]   ;;  %s3726_s4 = inlined_call_operand.vmem [shape: f32[1,1536], index: 4, kind: input, shape index: {}]   ;;  %s3727_s5 = inlined_call_operand.hbm [shape: bf16[512,128], index: 5, kind: input, shape index: {}]   ;;  %s3728_s6 = inlined_call_operand.vmem [shape: f32[1,128], index: 6, kind: input, shape index: {}]   ;;  %s3729_s7 = inlined_call_operand.hbm [shape: bf16[128,128], index: 7, kind: input, shape index: {}]   ;;  %s3730_s8 = inlined_call_operand.vmem [shape: f32[1,128], index: 8, kind: input, shape index: {}]   ;;  %s3731_s9 = inlined_call_operand.hbm [shape: f32[16,128], index: 9, kind: output, shape index: {}]  }
   0x1   :  { %3738 = sst [smem:[#allocation16_spill]] %s3723_s1 }
   0x2   :  { %3739 = sst [smem:[#allocation17_spill]] %s3731_s9 }
   0x3   :  { %14 = vsyncpa [#allocation3], 0 }
   0x4   :  { %16 = vsyncpa [#allocation3 + $0x1], 0 }
   0x5   :  { %17 = vsyncpa [#allocation6], 0 }
   0x6   :  { %18 = vsyncpa [#allocation9], 0 }
   0x7   :  { %19 = vsyncpa [#allocation4], 0 }
   0x8   :  { %21 = vsyncpa [#allocation4 + $0x1], 0  ;;  %s3315_s30 = smov 0   ;;  %s3317_s10 = smov 0  }
   0x9   :  { %s3319_s11 = smov 0   ;;  %s3321_s12 = smov 0  }
   0xa LB: > { %s3252_s13 = smov [#allocation5]   ;;  %s3336_s15 = sadd.s32 4294967295, %s3250_s12   ;;  %s3250_s12 = sphi %s3321_s12, %s3764_s12   ;;  %s3246_s11 = sphi %s3319_s11, %s3763_s11   ;;  %s3242_s10 = sphi %s3317_s10, %s3762_s10   ;;  %s3238_s30 = sphi %s3315_s30, %s3761_s30  }
   0xb   : > { %s264_s14 = sshll.u32 %s3252_s13, 4  ;;  %p2396_p0 = scmp.ge.s32.totalorder %s3250_s12, 1  ;;  %s3341_s14 = int_to_ptr.vmem [resolvable:$true] %s264_s14 }
   0xc   : > { %p3735_p1 = scmp.eq.s32.totalorder %s3336_s15, 0  ;;  %p252_p2 = scmp.lt.s32.totalorder %s3250_s12, 3 }
   0xd   : > { %s3253_s17 = smov [#allocation8]   ;;  %s3254_s20 = smov [#allocation7]  }
   0xe   : > { %p3343_p3 = pnand %p2396_p0, %p252_p2  ;;  %s296_s18 = sshll.u32 %s3253_s17, 4  ;;  %s3356_s18 = int_to_ptr.vmem [resolvable:$true] %s296_s18 }
   0xf   : > { %s280_s21 = sshll.u32 %s3254_s20, 4  ;;  %s3742_s1 = sld [smem:[#allocation16_spill]]  ;;  %s3358_s21 = int_to_ptr.vmem [resolvable:$true] %s280_s21 }
  0x10   : > { %s3740_s16 = scalar_select %p3343_p3, 1, 0 }
  0x11   : > { %p2752_p5 = pneg %p3343_p3 }
  0x13   : > { %p3352_p6 = pnand %p2752_p5, %p3735_p1 }
  0x15   : > { %s3034_s24 = scalar_lea.hbm %s3742_s1, 1024  ;;  %p3368_p8 = pneg %p3352_p6 }
  0x16   : > { %p3035_p7 = scmp.ne.s32.totalorder %s3742_s1, %s3034_s24  ;;  %p3041_p11 = scmp.lt.u32.totalorder %s3034_s24, %s3742_s1 }
  0x18   : > { %p3037_p9 = pnand %p3368_p8, %p3035_p7 }
  0x1a   : > { %p3038_p10 = pneg %p3037_p9 }
  0x1c   : > { %p3043_p12 = pnand %p3041_p11, %p3038_p10 }
  0x1e   : > { %3046 = shalt.err (!%p3043_p12)
}
  0x1f   : > { %s3047_s13 = scalar_lea.vmem %s3341_s14, 1024  ;;  %p3055_p5 = scmp.lt.s32.totalorder %s3341_s14, %s3341_s14 }
  0x20   : > { %p3048_p13 = scmp.ne.s32.totalorder %s3341_s14, %s3047_s13  ;;  %p3056_p4 = scmp.lt.s32.totalorder %s3047_s13, %s3047_s13 }
  0x22   : > { %p3050_p0 = pnand %p3048_p13, %p3368_p8  ;;  %p3057_p7 = por %p3056_p4, %p3055_p5 }
  0x24   : > { %p3051_p2 = pneg %p3050_p0 }
  0x26   : > { %p3058_p9 = pnand %p3057_p7, %p3051_p2 }
  0x28   : > { %3061 = shalt.err (!%p3058_p9)
}
  0x29   : > { %s3733_s17 = smov 64   ;;  %s3734_s20 = smov 4  }
  0x2a   : > { %2755 = dma.hbm_to_vmem [thread:$0]  (!%p3352_p6), %s3742_s1, 1024, %s3341_s14, [#allocation6], %s3733_s17, %s3733_s17, %s3734_s20  }
  0x2b   : > { %s3062_s26 = scalar_lea.hbm %s3727_s5, 4096 }
  0x2c   : > { %p3063_p4 = scmp.ne.s32.totalorder %s3727_s5, %s3062_s26  ;;  %p3069_p12 = scmp.lt.u32.totalorder %s3062_s26, %s3727_s5 }
  0x2e   : > { %p3065_p10 = pnand %p3063_p4, %p3368_p8 }
  0x30   : > { %p3066_p11 = pneg %p3065_p10 }
  0x32   : > { %p3071_p13 = pnand %p3069_p12, %p3066_p11 }
  0x34   : > { %3074 = shalt.err (!%p3071_p13)
}
  0x35   : > { %s3075_s14 = scalar_lea.vmem %s3356_s18, 4096  ;;  %p3083_p7 = scmp.lt.s32.totalorder %s3356_s18, %s3356_s18 }
  0x36   : > { %p3076_p0 = scmp.ne.s32.totalorder %s3356_s18, %s3075_s14  ;;  %p3084_p9 = scmp.lt.s32.totalorder %s3075_s14, %s3075_s14 }
  0x38   : > { %p3078_p2 = pnand %p3076_p0, %p3368_p8  ;;  %p3085_p4 = por %p3084_p9, %p3083_p7 }
  0x3a   : > { %p3079_p5 = pneg %p3078_p2 }
  0x3c   : > { %p3086_p10 = pnand %p3085_p4, %p3079_p5 }
  0x3e   : > { %3089 = shalt.err (!%p3086_p10)
}
  0x3f   : > { %2761 = dma.hbm_to_vmem [thread:$0]  (!%p3352_p6), %s3727_s5, 4096, %s3356_s18, [#allocation9], %s3733_s17, %s3733_s17, %s3734_s20  }
  0x40   : > { %s3090_s25 = scalar_lea.hbm %s3725_s3, 12288 }
  0x41   : > { %p3091_p11 = scmp.ne.s32.totalorder %s3725_s3, %s3090_s25  ;;  %p3097_p0 = scmp.lt.u32.totalorder %s3090_s25, %s3725_s3 }
  0x43   : > { %p3093_p12 = pnand %p3091_p11, %p3368_p8 }
  0x45   : > { %p3094_p13 = pneg %p3093_p12 }
  0x47   : > { %p3099_p2 = pnand %p3097_p0, %p3094_p13 }
  0x49   : > { %3102 = shalt.err (!%p3099_p2)
}
  0x4a   : > { %s3103_s18 = scalar_lea.vmem %s3358_s21, 12288  ;;  %p3111_p4 = scmp.lt.s32.totalorder %s3358_s21, %s3358_s21 }
  0x4b   : > { %p3104_p5 = scmp.ne.s32.totalorder %s3358_s21, %s3103_s18  ;;  %p3112_p10 = scmp.lt.s32.totalorder %s3103_s18, %s3103_s18 }
  0x4d   : > { %p3106_p7 = pnand %p3104_p5, %p3368_p8  ;;  %p3113_p11 = por %p3112_p10, %p3111_p4 }
  0x4f   : > { %p3107_p9 = pneg %p3106_p7 }
  0x51   : > { %p3114_p12 = pnand %p3113_p11, %p3107_p9 }
  0x53   : > { %3117 = shalt.err (!%p3114_p12)
}
  0x54   : > { %s3257_s14 = smov 768   ;;  %s3258_s9 = smov 48  }
  0x55   : > { %2758 = dma.hbm_to_vmem [thread:$0]  (!%p3352_p6), %s3725_s3, 12288, %s3358_s21, [#allocation6], %s3257_s14, %s3257_s14, %s3258_s9  }
  0x56   : > { %s3259_s24 = smov [#allocation10]   ;;  %s3118_s29 = scalar_lea.hbm %s3729_s7, 1024 }
  0x57   : > { %s312_s25 = sshll.u32 %s3259_s24, 4  ;;  %p3119_p13 = scmp.ne.s32.totalorder %s3729_s7, %s3118_s29  ;;  %s313_s25 = int_to_ptr.vmem [resolvable:$true] %s312_s25 }
  0x58   : > { %p3125_p5 = scmp.lt.u32.totalorder %s3118_s29, %s3729_s7 }
  0x59   : > { %p3121_p0 = pnand %p3119_p13, %p3368_p8 }
  0x5b   : > { %p3122_p2 = pneg %p3121_p0 }
  0x5d   : > { %p3127_p7 = pnand %p3125_p5, %p3122_p2 }
  0x5f   : > { %3130 = shalt.err (!%p3127_p7)
}
  0x60   : > { %s3131_s21 = scalar_lea.vmem %s313_s25, 1024  ;;  %p3139_p11 = scmp.lt.s32.totalorder %s313_s25, %s313_s25 }
  0x61   : > { %p3132_p9 = scmp.ne.s32.totalorder %s313_s25, %s3131_s21  ;;  %p3140_p12 = scmp.lt.s32.totalorder %s3131_s21, %s3131_s21 }
  0x63   : > { %p3134_p4 = pnand %p3132_p9, %p3368_p8  ;;  %p3141_p1 = por %p3140_p12, %p3139_p11 }
  0x65   : > { %p3135_p10 = pneg %p3134_p4 }
  0x67   : > { %p3142_p3 = pnand %p3141_p1, %p3135_p10 }
  0x69   : > { %3145 = shalt.err (!%p3142_p3)
}
  0x6a   : > { %s3744_s14 = smov 4   ;;  %s3745_s9 = smov 64  }
  0x6b   : > { %2764 = dma.hbm_to_vmem [thread:$0]  (!%p3352_p6), %s3729_s7, 1024, %s313_s25, [#allocation9], %s3745_s9, %s3745_s9, %s3744_s14  }
  0x6c   : > { %s2395_s19 = sadd.s32 4294967294, %s3250_s12   ;;  %s3464_s27 = sadd.s32 1, %s3250_s12  }
  0x6d   : > { %s31_s22 = ssub.s32 %s3250_s12, %s3464_s27  ;;  %s34_s23 = sadd.s32 1, %s3246_s11 }
  0x6e   : > { %p32_p1 = scmp.eq.s32.totalorder %s31_s22, 0  ;;  %p41_p3 = scmp.ne.s32.totalorder %s3246_s11, %s3242_s10 }
  0x6f   : > { %p42_p8 = scmp.eq.s32.totalorder %s3250_s12, 0  ;;  %p47_p13 = scmp.ne.s32.totalorder %s3242_s10, %s3238_s30 }
  0x70   : > { %s3475_s24 = scalar_select %p32_p1, %s3246_s11, %s34_s23  }
  0x71   : > { %p3477_p0 = por %p42_p8, %p41_p3  ;;  %p3747_p2 = scmp.eq.s32.totalorder %s3336_s15, 0 }
  0x72   : > { %p239_p5 = scmp.eq.s32.totalorder %s3336_s15, 1  ;;  %p245_p7 = scmp.eq.s32.totalorder %s2395_s19, 1 }
  0x73   : > { %p3483_p6 = por %p3747_p2, %p47_p13  ;;  %p2777_p9 = scmp.lt.s32.totalorder %s3250_s12, 2 }
  0x74   : > { %s329_s28 = sand.u32 1, %s3246_s11   ;;  %p3490_p4 = por %p239_p5, %p41_p3 }
  0x75   : > { %p3494_p10 = por %p245_p7, %p47_p13  ;;  %s2402_s18 = sshll.u32 %s329_s28, 3 }
  0x76   : > { %s3749_s29 = scalar_select %p3490_p4, 1, 0 }
  0x77   : > { %s3750_s13 = scalar_select %p3494_p10, 1, 0 }
  0x78   : > { %s2403_s21 = sshll.u32 %s3250_s12, 7  ;;  %s333_s20 = scalar_lea.vmem [#allocation2], %s2402_s18 }
  0x79   : > { %s3502_s17 = scalar_lea.hbm %s3722_s0, %s2403_s21  ;;  %s340_s19 = sshll.u32 %s333_s20, 4  ;;  %s3504_s19 = int_to_ptr.vmem [resolvable:$true] %s340_s19 }
  0x7a   : > { %p3508_p11 = pnand %p2777_p9, %p3477_p0  ;;  %s330_s23 = scalar_lea.sflag [#allocation3], %s329_s28 }
  0x7b   : > { %s3146_s1 = scalar_lea.hbm %s3502_s17, 128  ;;  %s3151_s14 = scalar_lea.hbm %s3722_s0, 256 }
  0x7c   : > { %p3147_p12 = scmp.ne.s32.totalorder %s3502_s17, %s3146_s1  ;;  %p3148_p1 = pneg %p3508_p11 }
  0x7d   : > { %p3152_p13 = scmp.lt.u32.totalorder %s3502_s17, %s3722_s0  ;;  %p3153_p0 = scmp.lt.u32.totalorder %s3151_s14, %s3146_s1 }
  0x7e   : > { %p3149_p3 = pnand %p3148_p1, %p3147_p12  ;;  %p3155_p5 = scmp.lt.u32.totalorder %s3146_s1, %s3502_s17 }
  0x7f   : > { %p3154_p2 = por %p3153_p0, %p3152_p13 }
  0x80   : > { %p3150_p8 = pneg %p3149_p3 }
  0x81   : > { %p3156_p7 = por %p3155_p5, %p3154_p2 }
  0x83   : > { %p3157_p9 = pnand %p3156_p7, %p3150_p8 }
  0x85   : > { %3160 = shalt.err (!%p3157_p9)
}
  0x86   : > { %s3161_s28 = scalar_lea.vmem %s3504_s19, 128  ;;  %s3260_s20 = smov [#allocation2]  }
  0x87   : > { %p3162_p12 = scmp.ne.s32.totalorder %s3504_s19, %s3161_s28  ;;  %s3166_s18 = sshll.u32 %s3260_s20, 4  ;;  %s3167_s18 = int_to_ptr.vmem [resolvable:$false] %s3166_s18 }
  0x88   : > { %s3168_s21 = scalar_lea.vmem %s3167_s18, 256  ;;  %p3169_p4 = scmp.lt.s32.totalorder %s3504_s19, %s3167_s18 }
  0x89   : > { %p3164_p3 = pnand %p3162_p12, %p3148_p1  ;;  %p3170_p13 = scmp.lt.s32.totalorder %s3168_s21, %s3161_s28 }
  0x8b   : > { %p3165_p10 = pneg %p3164_p3  ;;  %p3171_p0 = por %p3170_p13, %p3169_p4 }
  0x8d   : > { %p3172_p2 = pnand %p3171_p0, %p3165_p10 }
  0x8f   : > { %3175 = shalt.err (!%p3172_p2)
}
  0x90   : > { %2768 = dma.hbm_to_vmem [thread:$0]  (!%p3508_p11), %s3502_s17, 128, %s3504_s19, %s330_s23  }
  0x91   : > { %p3752_p8 = scmp.ne.s32.totalorder %s3740_s16, 0 }
  0x92   : > { %s3540_s1 = sand.u32 (!%p3752_p8), 1, %s3242_s10  }
  0x93   : > { %349 = sbr.rel (%p3752_p8) target bundleno = 1725 (0x6bd), region = 56  ;;  %s2405_s14 = sshll.u32 (!%p3752_p8), %s3540_s1, 3 }
  0x94   : > { %s352_s26 = scalar_lea.sflag (!%p3752_p8), [#allocation3], %s3540_s1  ;;  %s3546_s9 = scalar_lea.vmem (!%p3752_p8), [#allocation2], %s2405_s14 }
  0x9a   : > { %3221 = dma.done.wait (%p3483_p6), %s352_s26, 128  }
  0x9b   : > { %3223 = vsyncadd (%p3483_p6), %s352_s26, 4294967168  ;;  %p3753_p4 = scmp.eq.s32.totalorder %s3336_s15, 0 }
  0x9d   : > { %3225 = dma.done.wait (%p3753_p4), [#allocation6], 13312   ;;  %p3754_p10 = pmov %p3753_p4 }
  0x9e   : > { %p3755_p11 = pmov %p3753_p4 }
  0x9f   : > { %3227 = vsyncadd (%p3754_p10), [#allocation6], 4294953984 }
  0xa0   : > { %3229 = dma.done.wait (%p3755_p11), [#allocation9], 5120   ;;  %p3756_p1 = pmov %p3753_p4 }
  0xa1   : > { %v3261_v0 = vmov 0.0   ;;  %vm3262_vm0 = vmmov 0   ;;  %v2826_v1 = vld [vmem:[#allocation5] sm:$0xff]   ;;  %v2827_v2 = vld [vmem:[#allocation5 + $0x8] sm:$0xff]   ;;  %v2828_v3 = vld [vmem:[#allocation5 + $0x10] sm:$0xff]   ;;  %v3263_v45 = vmov 0  }
  0xa2   : > { %3231 = vsyncadd (%p3756_p1), [#allocation9], 4294962176  ;;  %2644 = vmatprep.subr.bf16.mxu0 %v3261_v0  ;;  %2660 = vmatprep.mubr.msk.bf16.mxu0 %vm3262_vm0, %v3261_v0  ;;  %v2834_v4 = vld [vmem:[#allocation7 + $0x4] ss:$48 sps:$4 sm:$0xff]   ;;  %v2829_v5 = vld [vmem:[#allocation5 + $0x18] sm:$0xff]   ;;  %vm1623_vm1 = vcmask 1043456  }
  0xa3   : > { %2645 = vmatpush3.bf16.msra.mxu0 %v2826_v1  ;;  %v2839_v6 = vld [vmem:[#allocation7] ss:$48 sps:$4 sm:$0xff]   ;;  %1161 = vmatprep.subr.bf16.mxu1 %v2834_v4  ;;  %v2840_v7 = vld [vmem:[#allocation7 + $0x64] ss:$48 sps:$4 sm:$0xff]   ;;  %v2831_v13 = vld [vmem:[#allocation5 + $0x28] sm:$0xff]   ;;  %vm1575_vm2 = vcmask 64512  }
  0xa4   : > { %2646 = vmatprep.subr.bf16.mxu0 %v3261_v0  ;;  %1162 = vmatpush1.bf16.msra.mxu1 %v2839_v6  ;;  %v2830_v8 = vld [vmem:[#allocation5 + $0x20] sm:$0xff]   ;;  %v2832_v16 = vld [vmem:[#allocation5 + $0x30] sm:$0xff]   ;;  %v2833_v17 = vld [vmem:[#allocation5 + $0x38] sm:$0xff]   ;;  %s2563_s26 = sshll.u32 %s3336_s15, 7  ;;  %s3757_s19 = sld [smem:[#allocation17_spill]] }
  0xa5   : > { %1163 = vmatprep.subr.bf16.mxu1 %v2840_v7  ;;  %v2845_v9 = vld [vmem:[#allocation7 + $0x60] ss:$48 sps:$4 sm:$0xff]   ;;  %v2846_v10 = vld [vmem:[#allocation7 + $0xc4] ss:$48 sps:$4 sm:$0xff]   ;;  %v2838_v21 = vld [vmem:[#allocation7 + $0xc] ss:$48 sps:$4 sm:$0xff]   ;;  %1193 = vmatprep.mubr.bf16.mxu1 %v3263_v45 }
  0xa6   : > { %v2851_v11 = vld [vmem:[#allocation7 + $0xc0] ss:$48 sps:$4 sm:$0xff]   ;;  %v2852_v12 = vld [vmem:[#allocation7 + $0x124] ss:$48 sps:$4 sm:$0xff]   ;;  %v2836_v24 = vld [vmem:[#allocation7 + $0x8] ss:$48 sps:$4 sm:$0xff]  }
  0xa7   : > { %2647 = vmatpush3.bf16.msra.mxu0 %v2827_v2  ;;  %v2857_v14 = vld [vmem:[#allocation7 + $0x120] ss:$48 sps:$4 sm:$0xff]   ;;  %v2858_v15 = vld [vmem:[#allocation7 + $0x184] ss:$48 sps:$4 sm:$0xff]   ;;  %v2844_v26 = vld [vmem:[#allocation7 + $0x6c] ss:$48 sps:$4 sm:$0xff]  }
  0xa8   : > { %2648 = vmatprep.subr.bf16.mxu0 %v3261_v0  ;;  %1164 = vmatpush1.bf16.msra.mxu1 %v2845_v9  ;;  %v2863_v18 = vld [vmem:[#allocation7 + $0x180] ss:$48 sps:$4 sm:$0xff]   ;;  %v2864_v19 = vld [vmem:[#allocation7 + $0x1e4] ss:$48 sps:$4 sm:$0xff]   ;;  %v2842_v28 = vld [vmem:[#allocation7 + $0x68] ss:$48 sps:$4 sm:$0xff]  }
  0xa9   : > { %1165 = vmatprep.subr.bf16.mxu1 %v2846_v10  ;;  %v407_v20 = vld [vmem:[%s3546_s9] sm:$0xff]  ;;  %s405_s9 = scalar_lea.vmem [#allocation11], %s2405_s14  ;;  %s2274_s15 = scalar_lea.sflag [#allocation4], %s3540_s1 }
  0xaa   : > { %v2869_v22 = vld [vmem:[#allocation7 + $0x1e0] ss:$48 sps:$4 sm:$0xff]   ;;  %v2870_v23 = vld [vmem:[#allocation7 + $0x244] ss:$48 sps:$4 sm:$0xff]   ;;  %v408_v25 = vpack.c.bf16 %v407_v20, %v407_v20  ;;  %v2850_v29 = vld [vmem:[#allocation7 + $0xcc] ss:$48 sps:$4 sm:$0xff]   ;;  %s3678_s22 = scalar_lea.hbm %s3757_s19, %s2563_s26 }
  0xab   : > { %2649 = vmatpush3.bf16.msra.mxu0 %v2828_v3  ;;  %v2875_v27 = vld [vmem:[#allocation7 + $0x240] ss:$48 sps:$4 sm:$0xff]   ;;  %v2848_v30 = vld [vmem:[#allocation7 + $0xc8] ss:$48 sps:$4 sm:$0xff]   ;;  %v2856_v31 = vld [vmem:[#allocation7 + $0x12c] ss:$48 sps:$4 sm:$0xff]  }
  0xac   : > { %2650 = vmatprep.subr.bf16.mxu0 %v3261_v0  ;;  %1166 = vmatpush1.bf16.msra.mxu1 %v2851_v11  ;;  %v2854_v32 = vld [vmem:[#allocation7 + $0x128] ss:$48 sps:$4 sm:$0xff]   ;;  %v2862_v33 = vld [vmem:[#allocation7 + $0x18c] ss:$48 sps:$4 sm:$0xff]   ;;  %v2876_v39 = vld [vmem:[#allocation7 + $0x2a4] ss:$48 sps:$4 sm:$0xff]  }
  0xad   : > { %1167 = vmatprep.subr.bf16.mxu1 %v2852_v12  ;;  %v2860_v34 = vld [vmem:[#allocation7 + $0x188] ss:$48 sps:$4 sm:$0xff]   ;;  %v2868_v35 = vld [vmem:[#allocation7 + $0x1ec] ss:$48 sps:$4 sm:$0xff]   ;;  %v2881_v42 = vld [vmem:[#allocation7 + $0x2a0] ss:$48 sps:$4 sm:$0xff]  }
  0xae   : > { %v2866_v36 = vld [vmem:[#allocation7 + $0x1e8] ss:$48 sps:$4 sm:$0xff]   ;;  %v2874_v37 = vld [vmem:[#allocation7 + $0x24c] ss:$48 sps:$4 sm:$0xff]   ;;  %v2884_v43 = vld [vmem:[#allocation7 + $0x14] ss:$48 sps:$4 sm:$0xff]  }
  0xaf   : > { %2651 = vmatpush3.bf16.msra.mxu0 %v2829_v5  ;;  %v2872_v38 = vld [vmem:[#allocation7 + $0x248] ss:$48 sps:$4 sm:$0xff]   ;;  %v2880_v40 = vld [vmem:[#allocation7 + $0x2ac] ss:$48 sps:$4 sm:$0xff]   ;;  %v2411_v46 = vld [vmem:[%s3724_s2] ss:$0 sm:$0xff] }
  0xb0   : > { %2652 = vmatprep.subr.bf16.mxu0 %v3261_v0  ;;  %1168 = vmatpush1.bf16.msra.mxu1 %v2857_v14  ;;  %v2878_v41 = vld [vmem:[#allocation7 + $0x2a8] ss:$48 sps:$4 sm:$0xff]   ;;  %v2887_v44 = vld [vmem:[#allocation7 + $0x1c] ss:$48 sps:$4 sm:$0xff]   ;;  %v2882_v51 = vld [vmem:[#allocation7 + $0x10] ss:$48 sps:$4 sm:$0xff]  }
  0xb1   : > { %1169 = vmatprep.subr.bf16.mxu1 %v2858_v15  ;;  %v2885_v52 = vld [vmem:[#allocation7 + $0x18] ss:$48 sps:$4 sm:$0xff]   ;;  %v2890_v55 = vld [vmem:[#allocation7 + $0x74] ss:$48 sps:$4 sm:$0xff]   ;;  %v2893_v56 = vld [vmem:[#allocation7 + $0x7c] ss:$48 sps:$4 sm:$0xff]  }
  0xb2   : > { %v2888_v57 = vld [vmem:[#allocation7 + $0x70] ss:$48 sps:$4 sm:$0xff]   ;;  %v2891_v58 = vld [vmem:[#allocation7 + $0x78] ss:$48 sps:$4 sm:$0xff]   ;;  %v2896_v59 = vld [vmem:[#allocation7 + $0xd4] ss:$48 sps:$4 sm:$0xff]  }
  0xb3   : > { %2653 = vmatpush3.bf16.msra.mxu0 %v2830_v8  ;;  %v2899_v60 = vld [vmem:[#allocation7 + $0xdc] ss:$48 sps:$4 sm:$0xff]   ;;  %v2894_v61 = vld [vmem:[#allocation7 + $0xd0] ss:$48 sps:$4 sm:$0xff]   ;;  %v2897_v62 = vld [vmem:[#allocation7 + $0xd8] ss:$48 sps:$4 sm:$0xff]  }
  0xb4   : > { %2654 = vmatprep.subr.bf16.mxu0 %v3261_v0  ;;  %1170 = vmatpush1.bf16.msra.mxu1 %v2863_v18  ;;  %v2902_v63 = vld [vmem:[#allocation7 + $0x134] ss:$48 sps:$4 sm:$0xff]   ;;  %v2905_v1 = vld [vmem:[#allocation7 + $0x13c] ss:$48 sps:$4 sm:$0xff]   ;;  %v2900_v2 = vld [vmem:[#allocation7 + $0x130] ss:$48 sps:$4 sm:$0xff]  }
  0xb5   : > { %1171 = vmatprep.subr.bf16.mxu1 %v2864_v19  ;;  %v2903_v3 = vld [vmem:[#allocation7 + $0x138] ss:$48 sps:$4 sm:$0xff]   ;;  %v2908_v4 = vld [vmem:[#allocation7 + $0x194] ss:$48 sps:$4 sm:$0xff]   ;;  %v2911_v5 = vld [vmem:[#allocation7 + $0x19c] ss:$48 sps:$4 sm:$0xff]  }
  0xb6   : > { %v2906_v6 = vld [vmem:[#allocation7 + $0x190] ss:$48 sps:$4 sm:$0xff]   ;;  %v2909_v7 = vld [vmem:[#allocation7 + $0x198] ss:$48 sps:$4 sm:$0xff]   ;;  %v2914_v8 = vld [vmem:[#allocation7 + $0x1f4] ss:$48 sps:$4 sm:$0xff]  }
  0xb7   : > { %2655 = vmatpush3.bf16.msra.mxu0 %v2831_v13  ;;  %v2917_v9 = vld [vmem:[#allocation7 + $0x1fc] ss:$48 sps:$4 sm:$0xff]   ;;  %v2912_v10 = vld [vmem:[#allocation7 + $0x1f0] ss:$48 sps:$4 sm:$0xff]   ;;  %v2915_v11 = vld [vmem:[#allocation7 + $0x1f8] ss:$48 sps:$4 sm:$0xff]  }
  0xb8   : > { %2656 = vmatprep.subr.bf16.mxu0 %v3261_v0  ;;  %1172 = vmatpush1.bf16.msra.mxu1 %v2869_v22  ;;  %v2920_v12 = vld [vmem:[#allocation7 + $0x254] ss:$48 sps:$4 sm:$0xff]   ;;  %v2923_v13 = vld [vmem:[#allocation7 + $0x25c] ss:$48 sps:$4 sm:$0xff]   ;;  %v2918_v14 = vld [vmem:[#allocation7 + $0x250] ss:$48 sps:$4 sm:$0xff]  }
  0xb9   : > { %1173 = vmatprep.subr.bf16.mxu1 %v2870_v23  ;;  %v2921_v15 = vld [vmem:[#allocation7 + $0x258] ss:$48 sps:$4 sm:$0xff]   ;;  %v2924_v18 = vld [vmem:[#allocation7 + $0x2b0] ss:$48 sps:$4 sm:$0xff]   ;;  %v2932_v20 = vld [vmem:[#allocation7 + $0x24] ss:$48 sps:$4 sm:$0xff]  }
  0xba   : > { %v2927_v19 = vld [vmem:[#allocation7 + $0x2b8] ss:$48 sps:$4 sm:$0xff]   ;;  %v2930_v22 = vld [vmem:[#allocation7 + $0x20] ss:$48 sps:$4 sm:$0xff]   ;;  %s2287_s16 = sshll.u32 %s405_s9, 4  ;;  %p3758_p5 = scmp.ne.s32.totalorder %s3749_s29, 0  ;;  %s3680_s16 = int_to_ptr.vmem [resolvable:$true] %s2287_s16 }
  0xbb   : > { %2657 = vmatpush3.bf16.msra.mxu0 %v2832_v16  ;;  %v2926_v16 = vld [vmem:[#allocation7 + $0x2b4] ss:$48 sps:$4 sm:$0xff]   ;;  %v2933_v23 = vld [vmem:[#allocation7 + $0x28] ss:$48 sps:$4 sm:$0xff]   ;;  %s3176_s23 = scalar_lea.vmem %s3680_s16, 128  ;;  %s3264_s14 = smov [#allocation11]  }
  0xbc   : > { %2658 = vmatprep.subr.bf16.mxu0 %v3261_v0  ;;  %1174 = vmatpush1.bf16.msra.mxu1 %v2875_v27  ;;  %v2939_v27 = vld [vmem:[#allocation7 + $0x88] ss:$48 sps:$4 sm:$0xff]   ;;  %p3177_p6 = scmp.ne.s32.totalorder %s3680_s16, %s3176_s23  ;;  %s3180_s28 = sshll.u32 %s3264_s14, 4  ;;  %s3181_s28 = int_to_ptr.vmem [resolvable:$false] %s3180_s28 }
  0xbd   : > { %1175 = vmatprep.subr.bf16.mxu1 %v2876_v39  ;;  %v2957_v39 = vld [vmem:[#allocation7 + $0x1a8] ss:$48 sps:$4 sm:$0xff]   ;;  %s3182_s20 = scalar_lea.vmem %s3181_s28, 256  ;;  %p3183_p12 = scmp.lt.s32.totalorder %s3680_s16, %s3181_s28 }
  0xbe   : > { %p3178_p7 = pnand %p3177_p6, %p3758_p5  ;;  %p3184_p3 = scmp.lt.s32.totalorder %s3182_s20, %s3176_s23 }
  0xbf   : > { %2659 = vmatpush3.bf16.msra.mxu0 %v2833_v17  ;;  %v2929_v17 = vld [vmem:[#allocation7 + $0x2bc] ss:$48 sps:$4 sm:$0xff]  }
  0xc0   : > { %1202 = vmatprep.subr.bf16.mxu0 %v2838_v21  ;;  %1176 = vmatpush1.bf16.msra.mxu1 %v2881_v42  ;;  %v2935_v21 = vld [vmem:[#allocation7 + $0x2c] ss:$48 sps:$4 sm:$0xff]   ;;  %v2960_v42 = vld [vmem:[#allocation7 + $0x200] ss:$48 sps:$4 sm:$0xff]   ;;  %p3179_p9 = pneg %p3178_p7  ;;  %p3185_p13 = por %p3184_p3, %p3183_p12 }
  0xc1   : > { %1243 = vmatprep.subr.bf16.mxu1 %v2884_v43  ;;  %v2963_v43 = vld [vmem:[#allocation7 + $0x208] ss:$48 sps:$4 sm:$0xff]  }
  0xc2   : > { %2661 = vmatmul.mubr.bf16.vlgmr.msra.gmra.mrb[0].mxu0 %v408_v25  ;;  %v2941_v25 = vld [vmem:[#allocation7 + $0x8c] ss:$48 sps:$4 sm:$0xff]   ;;  %p3186_p0 = pnand %p3185_p13, %p3179_p9 }
  0xc3   : > { %1203 = vmatpush1.bf16.msra.mxu0 %v2836_v24  ;;  %1234 = vmatprep.mubr.bf16.mxu0 %v3263_v45  ;;  %v2938_v24 = vld [vmem:[#allocation7 + $0x84] ss:$48 sps:$4 sm:$0xff]  }
  0xc4   : > { %1204 = vmatprep.subr.bf16.mxu0 %v2844_v26  ;;  %v2936_v26 = vld [vmem:[#allocation7 + $0x80] ss:$48 sps:$4 sm:$0xff]  }
  0xc7   : > { %1205 = vmatpush1.bf16.msra.mxu0 %v2842_v28  ;;  %v2944_v28 = vld [vmem:[#allocation7 + $0xe4] ss:$48 sps:$4 sm:$0xff]  }
  0xc8   : > { %1206 = vmatprep.subr.bf16.mxu0 %v2850_v29  ;;  %v2947_v29 = vld [vmem:[#allocation7 + $0xec] ss:$48 sps:$4 sm:$0xff]  }
  0xcb   : > { %1207 = vmatpush1.bf16.msra.mxu0 %v2848_v30  ;;  %v2942_v30 = vld [vmem:[#allocation7 + $0xe0] ss:$48 sps:$4 sm:$0xff]  }
  0xcc   : > { %1208 = vmatprep.subr.bf16.mxu0 %v2856_v31  ;;  %v2945_v31 = vld [vmem:[#allocation7 + $0xe8] ss:$48 sps:$4 sm:$0xff]  }
  0xcf   : > { %1209 = vmatpush1.bf16.msra.mxu0 %v2854_v32  ;;  %v2950_v32 = vld [vmem:[#allocation7 + $0x144] ss:$48 sps:$4 sm:$0xff]  }
  0xd0   : > { %1210 = vmatprep.subr.bf16.mxu0 %v2862_v33  ;;  %v2953_v33 = vld [vmem:[#allocation7 + $0x14c] ss:$48 sps:$4 sm:$0xff]  }
  0xd3   : > { %1211 = vmatpush1.bf16.msra.mxu0 %v2860_v34  ;;  %v2948_v34 = vld [vmem:[#allocation7 + $0x140] ss:$48 sps:$4 sm:$0xff]  }
  0xd4   : > { %1212 = vmatprep.subr.bf16.mxu0 %v2868_v35  ;;  %v2951_v35 = vld [vmem:[#allocation7 + $0x148] ss:$48 sps:$4 sm:$0xff]  }
  0xd7   : > { %1213 = vmatpush1.bf16.msra.mxu0 %v2866_v36  ;;  %v2956_v36 = vld [vmem:[#allocation7 + $0x1a4] ss:$48 sps:$4 sm:$0xff]  }
  0xd8   : > { %1214 = vmatprep.subr.bf16.mxu0 %v2874_v37  ;;  %v2959_v37 = vld [vmem:[#allocation7 + $0x1ac] ss:$48 sps:$4 sm:$0xff]  }
  0xdb   : > { %1215 = vmatpush1.bf16.msra.mxu0 %v2872_v38  ;;  %v2954_v38 = vld [vmem:[#allocation7 + $0x1a0] ss:$48 sps:$4 sm:$0xff]  }
  0xdc   : > { %1216 = vmatprep.subr.bf16.mxu0 %v2880_v40  ;;  %v2962_v40 = vld [vmem:[#allocation7 + $0x204] ss:$48 sps:$4 sm:$0xff]  }
  0xdf   : > { %1217 = vmatpush1.bf16.msra.mxu0 %v2878_v41  ;;  %v2965_v41 = vld [vmem:[#allocation7 + $0x20c] ss:$48 sps:$4 sm:$0xff]  }
  0xe0   : > { %1284 = vmatprep.subr.bf16.mxu0 %v2887_v44  ;;  %v2968_v44 = vld [vmem:[#allocation7 + $0x264] ss:$48 sps:$4 sm:$0xff]  }
 0x195   : > { %v514_v47 = vpop.f32.mrb[0].mxu0 }
 0x196   : > { %v515_v48 = vadd.f32 %v2411_v46, %v514_v47  ;;  %v2662_v49 = vpop.f32.mrb[1].mxu0  ;;  %v2966_v46 = vld [vmem:[#allocation7 + $0x260] ss:$48 sps:$4 sm:$0xff]   ;;  %v2969_v47 = vld [vmem:[#allocation7 + $0x268] ss:$48 sps:$4 sm:$0xff]  }
 0x197   : > { %v517_v50 = vpop.f32.mrb[2].mxu0  ;;  %v2977_v49 = vld [vmem:[#allocation7 + $0x2cc] ss:$48 sps:$4 sm:$0xff]  }
 0x198   : > { %v3576_v53 = vpack.c.bf16 %v515_v48, %v515_v48  ;;  %v2663_v54 = vpop.f32.mrb[3].mxu0  ;;  %v2974_v48 = vld [vmem:[#allocation7 + $0x2c4] ss:$48 sps:$4 sm:$0xff]   ;;  %v2972_v50 = vld [vmem:[#allocation7 + $0x2c0] ss:$48 sps:$4 sm:$0xff]  }
 0x19a   : > { %1194 = vmatmul.mubr.bf16.vlgmr.msra.gmra.mrb[0].mxu1 %v3576_v53  ;;  %1235 = vmatmul.mubr.bf16.vlgmr.msra.gmra.mrb[4].mxu0 %v3576_v53 }
 0x19b   : > { %1244 = vmatpush1.bf16.msra.mxu1 %v2882_v51  ;;  %1285 = vmatpush1.bf16.msra.mxu0 %v2885_v52  ;;  %v2975_v51 = vld [vmem:[#allocation7 + $0x2c8] ss:$48 sps:$4 sm:$0xff]   ;;  %v621_v52 = vlaneseq }
 0x19c   : > { %1245 = vmatprep.subr.bf16.mxu1 %v2890_v55  ;;  %1286 = vmatprep.subr.bf16.mxu0 %v2893_v56  ;;  %v618_v56 = vld [vmem:[%s3726_s4 + $0x8] sm:$0xf] }
 0x19d   : > { %1275 = vmatprep.mubr.bf16.mxu1 %v3263_v45  ;;  %1316 = vmatprep.mubr.bf16.mxu0 %v3263_v45  ;;  %v3591_v54 = vshrl.u32 %v621_v52, 7 }
 0x19f   : > { %1246 = vmatpush1.bf16.msra.mxu1 %v2888_v57  ;;  %1287 = vmatpush1.bf16.msra.mxu0 %v2891_v58  ;;  %v631_v55 = vsub.s32 2, %v3591_v54  ;;  %v627_v57 = vsub.s32 1, %v3591_v54  ;;  %v635_v58 = vsub.s32 3, %v3591_v54 }
 0x1a0   : > { %1247 = vmatprep.subr.bf16.mxu1 %v2896_v59  ;;  %1288 = vmatprep.subr.bf16.mxu0 %v2899_v60 }
 0x1a1   : > { %v3599_v59 = vrot.slane %v618_v56, %v631_v55  ;;  %v3601_v60 = vrot.slane %v618_v56, %v627_v57 }
 0x1a3   : > { %1248 = vmatpush1.bf16.msra.mxu1 %v2894_v61  ;;  %1289 = vmatpush1.bf16.msra.mxu0 %v2897_v62 }
 0x1a4   : > { %1249 = vmatprep.subr.bf16.mxu1 %v2902_v63  ;;  %1290 = vmatprep.subr.bf16.mxu0 %v2905_v1 }
 0x1a7   : > { %1250 = vmatpush1.bf16.msra.mxu1 %v2900_v2  ;;  %1291 = vmatpush1.bf16.msra.mxu0 %v2903_v3 }
 0x1a8   : > { %1251 = vmatprep.subr.bf16.mxu1 %v2908_v4  ;;  %1292 = vmatprep.subr.bf16.mxu0 %v2911_v5 }
 0x1ab   : > { %1252 = vmatpush1.bf16.msra.mxu1 %v2906_v6  ;;  %1293 = vmatpush1.bf16.msra.mxu0 %v2909_v7  ;;  %v639_v6 = vsub.s32 4, %v3591_v54  ;;  %v617_v7 = vld [vmem:[%s3726_s4] sm:$0xff] }
 0x1ac   : > { %1253 = vmatprep.subr.bf16.mxu1 %v2914_v8  ;;  %1294 = vmatprep.subr.bf16.mxu0 %v2917_v9  ;;  %v623_v9 = vsub.s32 0, %v3591_v54 }
 0x1ad   : > { %v640_v8 = vrot.slane %v617_v7, %v639_v6 }
 0x1af   : > { %1254 = vmatpush1.bf16.msra.mxu1 %v2912_v10  ;;  %1295 = vmatpush1.bf16.msra.mxu0 %v2915_v11  ;;  %v643_v10 = vsub.s32 5, %v3591_v54 }
 0x1b0   : > { %1255 = vmatprep.subr.bf16.mxu1 %v2920_v12  ;;  %1296 = vmatprep.subr.bf16.mxu0 %v2923_v13 }
 0x1b3   : > { %1256 = vmatpush1.bf16.msra.mxu1 %v2918_v14  ;;  %1297 = vmatpush1.bf16.msra.mxu0 %v2921_v15 }
 0x1b4   : > { %1257 = vmatprep.subr.bf16.mxu1 %v2926_v16  ;;  %1298 = vmatprep.subr.bf16.mxu0 %v2929_v17  ;;  %v624_v16 = vrot.slane %v617_v7, %v623_v9 }
 0x1b7   : > { %1258 = vmatpush1.bf16.msra.mxu1 %v2924_v18  ;;  %1299 = vmatpush1.bf16.msra.mxu0 %v2927_v19 }
 0x1b8   : > { %1325 = vmatprep.subr.bf16.mxu1 %v2932_v20  ;;  %1366 = vmatprep.subr.bf16.mxu0 %v2935_v21  ;;  %v644_v20 = vrot.slane %v617_v7, %v643_v10 }
 0x1ba   : > { %1276 = vmatmul.mubr.bf16.vlgmr.msra.gmra.mrb[4].mxu1 %v3576_v53  ;;  %1317 = vmatmul.mubr.bf16.vlgmr.msra.gmra.mrb[8].mxu0 %v3576_v53 }
 0x1bb   : > { %1326 = vmatpush1.bf16.msra.mxu1 %v2930_v22  ;;  %1367 = vmatpush1.bf16.msra.mxu0 %v2933_v23 }
 0x1bc   : > { %1327 = vmatprep.subr.bf16.mxu1 %v2938_v24  ;;  %1368 = vmatprep.subr.bf16.mxu0 %v2941_v25  ;;  %v647_v24 = vsub.s32 6, %v3591_v54 }
 0x1bd   : > { %1357 = vmatprep.mubr.bf16.mxu1 %v3263_v45  ;;  %1398 = vmatprep.mubr.bf16.mxu0 %v3263_v45  ;;  %v2971_v45 = vld [vmem:[#allocation7 + $0x26c] ss:$48 sps:$4 sm:$0xff]  }
 0x1bf   : > { %1328 = vmatpush1.bf16.msra.mxu1 %v2936_v26  ;;  %1369 = vmatpush1.bf16.msra.mxu0 %v2939_v27  ;;  %v628_v27 = vrot.slane %v617_v7, %v627_v57 }
 0x1c0   : > { %1329 = vmatprep.subr.bf16.mxu1 %v2944_v28  ;;  %1370 = vmatprep.subr.bf16.mxu0 %v2947_v29  ;;  %v648_v28 = vrot.slane %v617_v7, %v647_v24 }
 0x1c3   : > { %1330 = vmatpush1.bf16.msra.mxu1 %v2942_v30  ;;  %1371 = vmatpush1.bf16.msra.mxu0 %v2945_v31 }
 0x1c4   : > { %1331 = vmatprep.subr.bf16.mxu1 %v2950_v32  ;;  %1372 = vmatprep.subr.bf16.mxu0 %v2953_v33  ;;  %v651_v32 = vsub.s32 7, %v3591_v54  ;;  %v632_v33 = vrot.slane %v617_v7, %v631_v55 }
 0x1c7   : > { %1332 = vmatpush1.bf16.msra.mxu1 %v2948_v34  ;;  %1373 = vmatpush1.bf16.msra.mxu0 %v2951_v35 }
 0x1c8   : > { %1333 = vmatprep.subr.bf16.mxu1 %v2956_v36  ;;  %1374 = vmatprep.subr.bf16.mxu0 %v2959_v37  ;;  %v652_v36 = vrot.slane %v617_v7, %v651_v32 }
 0x1cb   : > { %1334 = vmatpush1.bf16.msra.mxu1 %v2954_v38  ;;  %1375 = vmatpush1.bf16.msra.mxu0 %v2957_v39 }
 0x1cc   : > { %1335 = vmatprep.subr.bf16.mxu1 %v2962_v40  ;;  %1376 = vmatprep.subr.bf16.mxu0 %v2965_v41  ;;  %v636_v40 = vrot.slane %v617_v7, %v635_v58 }
 0x1cf   : > { %1336 = vmatpush1.bf16.msra.mxu1 %v2960_v42  ;;  %1377 = vmatpush1.bf16.msra.mxu0 %v2963_v43  ;;  %v656_v42 = vrot.slane %v618_v56, %v623_v9 }
 0x1d0   : > { %1337 = vmatprep.subr.bf16.mxu1 %v2968_v44  ;;  %1378 = vmatprep.subr.bf16.mxu0 %v2971_v45 }
 0x1d3   : > { %1338 = vmatpush1.bf16.msra.mxu1 %v2966_v46  ;;  %1379 = vmatpush1.bf16.msra.mxu0 %v2969_v47 }
 0x1d4   : > { %1339 = vmatprep.subr.bf16.mxu1 %v2974_v48  ;;  %1380 = vmatprep.subr.bf16.mxu0 %v2977_v49 }
 0x1d7   : > { %1340 = vmatpush1.bf16.msra.mxu1 %v2972_v50  ;;  %1381 = vmatpush1.bf16.msra.mxu0 %v2975_v51 }
 0x1d8   : > { %2664 = vmatprep.subr.bf16.mxu1 %v3261_v0 }
 0x1da   : > { %1358 = vmatmul.mubr.bf16.vlgmr.msra.gmra.mrb[8].mxu1 %v3576_v53  ;;  %1399 = vmatmul.mubr.bf16.vlgmr.msra.gmra.mrb[12].mxu0 %v3576_v53  ;;  %v3603_v53 = vrot.slane %v618_v56, %v635_v58 }
 0x1db   : > { %2666 = vmatprep.mubr.msk.bf16.mxu1 %vm3262_vm0, %v3261_v0 }
 0x26d   : > { %v1195_v61 = vpop.f32.mrb[0].mxu1  ;;  %v1236_v62 = vpop.f32.mrb[4].mxu0 }
 0x26e   : > { %v1197_v63 = vpop.f32.mrb[1].mxu1  ;;  %v1238_v1 = vpop.f32.mrb[5].mxu0  ;;  %v1196_v23 = vadd.f32 %v1195_v61, %v624_v16  ;;  %v1237_v37 = vadd.f32 %v1236_v62, %v632_v33 }
 0x26f   : > { %v1199_v2 = vpop.f32.mrb[2].mxu1  ;;  %v1240_v3 = vpop.f32.mrb[6].mxu0  ;;  %v1198_v30 = vadd.f32 %v1197_v63, %v628_v27  ;;  %v1239_v43 = vadd.f32 %v1238_v1, %v636_v40 }
 0x270   : > { %v1200_v4 = vpop.f32.mrb[3].mxu1  ;;  %v1241_v5 = vpop.f32.mrb[7].mxu0  ;;  %v1407_v26 = vpack.c.bf16 %v1196_v23, %v1196_v23  ;;  %v1409_v39 = vpack.c.bf16 %v1237_v37, %v1237_v37 }
 0x271   : > { %v1408_v34 = vpack.c.bf16 %v1198_v30, %v1198_v30  ;;  %v1410_v50 = vpack.c.bf16 %v1239_v43, %v1239_v43 }
 0x28d   : > { %v1277_v11 = vpop.f32.mrb[4].mxu1  ;;  %v1318_v12 = vpop.f32.mrb[8].mxu0 }
 0x28e   : > { %v1278_v13 = vadd.f32 %v1277_v11, %v640_v8  ;;  %v1279_v14 = vpop.f32.mrb[5].mxu1  ;;  %v1320_v15 = vpop.f32.mrb[9].mxu0  ;;  %v1319_v31 = vadd.f32 %v1318_v12, %v648_v28 }
 0x28f   : > { %v1281_v17 = vpop.f32.mrb[6].mxu1  ;;  %v1322_v18 = vpop.f32.mrb[10].mxu0  ;;  %v1280_v25 = vadd.f32 %v1279_v14, %v644_v20  ;;  %v1321_v38 = vadd.f32 %v1320_v15, %v652_v36 }
 0x290   : > { %v1411_v19 = vpack.c.bf16 %v1278_v13, %v1278_v13  ;;  %v1282_v21 = vpop.f32.mrb[7].mxu1  ;;  %v1323_v22 = vpop.f32.mrb[11].mxu0  ;;  %v1413_v35 = vpack.c.bf16 %v1319_v31, %v1319_v31 }
 0x291   : > { %v1412_v29 = vpack.c.bf16 %v1280_v25, %v1280_v25  ;;  %v1414_v41 = vpack.c.bf16 %v1321_v38, %v1321_v38 }
 0x292   : > { %2665 = vmatpush3.bf16.xpose.msra.mxu1 %v1411_v19 }
 0x293   : > { %2670 = vmatprep.subr.bf16.mxu1 %v3261_v0 }
 0x299   : > { %2667 = vmatmul.mubr.bf16.vlgmr.msra.gmra.mrb[12].mxu1 %v1407_v26 }
 0x29a   : > { %2671 = vmatpush3.bf16.xpose.msra.mxu1 %v1412_v29  ;;  %2672 = vmatprep.mubr.msk.bf16.mxu1 %vm3262_vm0, %v3261_v0 }
 0x29b   : > { %2676 = vmatprep.subr.bf16.mxu1 %v3261_v0 }
 0x2a1   : > { %2673 = vmatmul.mubr.bf16.vlgmr.msra.gmra.mrb[16].mxu1 %v1408_v34 }
 0x2a2   : > { %2677 = vmatpush3.bf16.xpose.msra.mxu1 %v1413_v35  ;;  %2678 = vmatprep.mubr.msk.bf16.mxu1 %vm3262_vm0, %v3261_v0 }
 0x2a3   : > { %2682 = vmatprep.subr.bf16.mxu1 %v3261_v0 }
 0x2a9   : > { %2679 = vmatmul.mubr.bf16.vlgmr.msra.gmra.mrb[20].mxu1 %v1409_v39 }
 0x2aa   : > { %2683 = vmatpush3.bf16.xpose.msra.mxu1 %v1414_v41  ;;  %2684 = vmatprep.mubr.msk.bf16.mxu1 %vm3262_vm0, %v3261_v0 }
 0x2ab   : > { %2688 = vmatprep.subr.bf16.mxu1 %v3261_v0 }
 0x2ad   : > { %v1359_v44 = vpop.f32.mrb[8].mxu1  ;;  %v1400_v45 = vpop.f32.mrb[12].mxu0 }
 0x2ae   : > { %v1360_v46 = vadd.f32 %v1359_v44, %v656_v42  ;;  %v1401_v47 = vadd.f32 %v1400_v45, %v3599_v59  ;;  %v1361_v48 = vpop.f32.mrb[9].mxu1  ;;  %v1402_v49 = vpop.f32.mrb[13].mxu0 }
 0x2af   : > { %v1362_v51 = vadd.f32 %v1361_v48, %v3601_v60  ;;  %v1403_v52 = vadd.f32 %v1402_v49, %v3603_v53  ;;  %v1363_v54 = vpop.f32.mrb[10].mxu1  ;;  %v1404_v55 = vpop.f32.mrb[14].mxu0  ;;  %v2980_v48 = vld [vmem:[#allocation8 + $0x48] sm:$0xff]  }
 0x2b0   : > { %v1616_v56 = vpack.c.bf16 %v1360_v46, %v1360_v46  ;;  %v1618_v57 = vpack.c.bf16 %v1401_v47, %v1401_v47  ;;  %v1364_v58 = vpop.f32.mrb[11].mxu1  ;;  %v1405_v61 = vpop.f32.mrb[15].mxu0  ;;  %v2978_v46 = vld [vmem:[#allocation8 + $0x40] sm:$0xff]   ;;  %v2981_v49 = vld [vmem:[#allocation8 + $0x8] sm:$0xff]   ;;  %v2983_v54 = vld [vmem:[#allocation8 + $0x10] sm:$0xff]  }
 0x2b1   : > { %v1617_v62 = vpack.c.bf16 %v1362_v51, %v1362_v51  ;;  %v1619_v63 = vpack.c.bf16 %v1403_v52, %v1403_v52  ;;  %2685 = vmatmul.mubr.bf16.vlgmr.msra.gmra.mrb[24].mxu1 %v1410_v50  ;;  %v2979_v47 = vld [vmem:[#allocation8] sm:$0xff]   ;;  %2591 = vmatprep.subr.bf16.mxu0 %v2978_v46  ;;  %v2982_v52 = vld [vmem:[#allocation8 + $0x50] sm:$0xff]   ;;  %v2984_v55 = vld [vmem:[#allocation8 + $0x58] sm:$0xff]  }
 0x2b2   : > { %v1625_v1 = vsel %vm1623_vm1, %v1616_v56, 0  ;;  %v1717_v59 = vsel %vm1623_vm1, %v1618_v57, 0  ;;  %2690 = vmatprep.mubr.msk.bf16.mxu1 %vm3262_vm0, %v3261_v0  ;;  %2592 = vmatpush3.bf16.msra.mxu0 %v2979_v47  ;;  %v2987_v50 = vld [vmem:[#allocation8 + $0xc0] sm:$0xff]   ;;  %v2985_v56 = vld [vmem:[#allocation8 + $0x18] sm:$0xff]   ;;  %v2990_v61 = vld [vmem:[#allocation8 + $0x68] sm:$0xff]  }
 0x2b3   : > { %v1671_v60 = vsel %vm1623_vm1, %v1617_v62, 0  ;;  %v3632_v53 = vsel %vm1623_vm1, %v1619_v63, 0  ;;  %2689 = vmatpush3.bf16.msra.mxu1 %v1625_v1  ;;  %v2989_v51 = vld [vmem:[#allocation8 + $0x80] sm:$0xff]   ;;  %2593 = vmatprep.subr.bf16.mxu0 %v2980_v48  ;;  %v2991_v62 = vld [vmem:[#allocation8 + $0xc8] sm:$0xff]  }
 0x2b4   : > { %2694 = vmatprep.subr.bf16.mxu1 %v3261_v0  ;;  %v2986_v57 = vld [vmem:[#allocation8 + $0x60] sm:$0xff]   ;;  %v2992_v63 = vld [vmem:[#allocation8 + $0x28] sm:$0xff]  }
 0x2b5   : > { %v2988_v58 = vld [vmem:[#allocation8 + $0x20] sm:$0xff]   ;;  %v2993_v1 = vld [vmem:[#allocation8 + $0x88] sm:$0xff]  }
 0x2b6   : > { %2594 = vmatpush3.bf16.msra.mxu0 %v2981_v49  ;;  %v3012_v49 = vld [vmem:[#allocation10 + $0x10] sm:$0xff]  }
 0x2b7   : > { %2595 = vmatprep.subr.bf16.mxu0 %v2982_v52  ;;  %v3015_v52 = vld [vmem:[#allocation10 + $0x28] sm:$0xff]  }
 0x2ba   : > { %2596 = vmatpush3.bf16.msra.mxu0 %v2983_v54  ;;  %v3016_v54 = vld [vmem:[#allocation10 + $0x30] sm:$0xff]  }
 0x2bb   : > { %2597 = vmatprep.subr.bf16.mxu0 %v2984_v55  ;;  %v3017_v55 = vld [vmem:[#allocation10 + $0x38] sm:$0xff]  }
 0x2be   : > { %2598 = vmatpush3.bf16.msra.mxu0 %v2985_v56 }
 0x2bf   : > { %2599 = vmatprep.subr.bf16.mxu0 %v2986_v57 }
 0x2c2   : > { %2600 = vmatpush3.bf16.msra.mxu0 %v2988_v58 }
 0x2c3   : > { %2601 = vmatprep.subr.bf16.mxu0 %v2990_v61 }
 0x2c6   : > { %2602 = vmatpush3.bf16.msra.mxu0 %v2992_v63  ;;  %v2520_v63 = vld [vmem:[%s3728_s6] ss:$0 sm:$0xff] }
 0x36c   : > { %v1449_v2 = vpop.f32.mrb[12].mxu1 }
 0x36d   : > { %v2668_v3 = vpop.f32.mrb[13].mxu1  ;;  %v1576_v4 = vsel %vm1575_vm2, %v1449_v2, -inf }
 0x36e   : > { %1577 = vmax.xlane.f32.xlu0 %v1576_v4  ;;  %v1452_v5 = vpop.f32.mrb[14].mxu1  ;;  %v2998_v3 = vld [vmem:[#allocation8 + $0x78] sm:$0xff]  }
 0x36f   : > { %v2669_v6 = vpop.f32.mrb[15].mxu1  ;;  %v2999_v4 = vld [vmem:[#allocation8 + $0xd8] sm:$0xff]  }
 0x370   : > { %v3000_v5 = vld [vmem:[#allocation8 + $0x38] sm:$0xff]  }
 0x371   : > { %v3001_v6 = vld [vmem:[#allocation8 + $0x98] sm:$0xff]  }
 0x374   : > { %v1489_v7 = vpop.f32.mrb[16].mxu1 }
 0x375   : > { %v2674_v8 = vpop.f32.mrb[17].mxu1  ;;  %v1579_v9 = vsel %vm1575_vm2, %v1489_v7, -inf }
 0x376   : > { %1580 = vmax.xlane.f32.xlu0 %v1579_v9  ;;  %v1492_v10 = vpop.f32.mrb[18].mxu1  ;;  %v3003_v8 = vld [vmem:[#allocation8 + $0xa0] sm:$0xff]   ;;  %v3004_v9 = vld [vmem:[#allocation8 + $0xe8] sm:$0xff]  }
 0x377   : > { %v2675_v11 = vpop.f32.mrb[19].mxu1  ;;  %v3005_v10 = vld [vmem:[#allocation8 + $0xa8] sm:$0xff]  }
 0x378   : > { %v3006_v11 = vld [vmem:[#allocation8 + $0xf0] sm:$0xff]  }
 0x37c   : > { %v1529_v12 = vpop.f32.mrb[20].mxu1 }
 0x37d   : > { %v2680_v13 = vpop.f32.mrb[21].mxu1  ;;  %v1582_v14 = vsel %vm1575_vm2, %v1529_v12, -inf }
 0x37e   : > { %1583 = vmax.xlane.f32.xlu1 %v1582_v14  ;;  %v1532_v15 = vpop.f32.mrb[22].mxu1  ;;  %v3008_v13 = vld [vmem:[#allocation8 + $0xf8] sm:$0xff]  }
 0x37f   : > { %v2681_v16 = vpop.f32.mrb[23].mxu1  ;;  %v3009_v14 = vld [vmem:[#allocation8 + $0xb8] sm:$0xff]  }
 0x384   : > { %v1569_v17 = vpop.f32.mrb[24].mxu1 }
 0x385   : > { %v2686_v18 = vpop.f32.mrb[25].mxu1  ;;  %v1585_v19 = vsel %vm1575_vm2, %v1569_v17, -inf }
 0x386   : > { %1586 = vmax.xlane.f32.xlu1 %v1585_v19  ;;  %v1572_v20 = vpop.f32.mrb[26].mxu1 }
 0x387   : > { %v2687_v21 = vpop.f32.mrb[27].mxu1 }
 0x3fb   : > { %v1578_v22 = vpop.xlane.xlu0 %1577 }
 0x3fc   : > { %v1588_v23 = vsub.f32 %v1449_v2, %v1578_v22  ;;  %v2997_v2 = vld [vmem:[#allocation8 + $0x90] sm:$0xff]  }
 0x3fe   : > { %v1592_v24 = vmul.f32 1.442695, %v1588_v23 }
 0x400   : > { %3018 = vpow2.f32 %v1592_v24 }
 0x403   : > { %v1581_v25 = vpop.xlane.xlu0 %1580 }
 0x404   : > { %v1589_v26 = vsub.f32 %v1489_v7, %v1581_v25  ;;  %v3002_v7 = vld [vmem:[#allocation8 + $0xe0] sm:$0xff]  }
 0x406   : > { %v1594_v27 = vmul.f32 1.442695, %v1589_v26 }
 0x408   : > { %3020 = vpow2.f32 %v1594_v27 }
 0x40a   : > { %v3019_v28 = vpop.eup %3018 }
 0x40b   : > { %v1584_v29 = vpop.xlane.xlu1 %1583  ;;  %v1600_v30 = vsel %vm1575_vm2, %v3019_v28, 0.0  ;;  %v1612_v31 = vpack.c.bf16 %v3019_v28, %v3019_v28 }
 0x40c   : > { %v1590_v32 = vsub.f32 %v1529_v12, %v1584_v29  ;;  %1601 = vadd.xlane.f32.xlu1 %v1600_v30  ;;  %v3007_v12 = vld [vmem:[#allocation8 + $0xb0] sm:$0xff]  }
 0x40d   : > { %2691 = vmatmul.mubr.msk.bf16.vlgmr.msra.gmra.mrb[28].mxu1 %vm1575_vm2, %v1612_v31 }
 0x40e   : > { %v1596_v33 = vmul.f32 1.442695, %v1590_v32  ;;  %2695 = vmatpush3.bf16.msra.mxu1 %v1671_v60  ;;  %2696 = vmatprep.mubr.msk.bf16.mxu1 %vm3262_vm0, %v3261_v0  ;;  %v2995_v60 = vld [vmem:[#allocation8 + $0xd0] sm:$0xff]   ;;  %v3010_v32 = vld [vmem:[#allocation10] sm:$0xff]  }
 0x40f   : > { %2700 = vmatprep.subr.bf16.mxu1 %v3261_v0 }
 0x410   : > { %3022 = vpow2.f32 %v1596_v33 }
 0x412   : > { %v3021_v34 = vpop.eup %3020 }
 0x413   : > { %v1587_v35 = vpop.xlane.xlu1 %1586  ;;  %v1603_v36 = vsel %vm1575_vm2, %v3021_v34, 0.0  ;;  %v1613_v37 = vpack.c.bf16 %v3021_v34, %v3021_v34  ;;  %v3011_v34 = vld [vmem:[#allocation10 + $0x8] sm:$0xff]  }
 0x414   : > { %v1591_v38 = vsub.f32 %v1569_v17, %v1587_v35  ;;  %1604 = vadd.xlane.f32.xlu0 %v1603_v36 }
 0x415   : > { %2697 = vmatmul.mubr.msk.bf16.vlgmr.msra.gmra.mrb[32].mxu1 %vm1575_vm2, %v1613_v37 }
 0x416   : > { %v1598_v39 = vmul.f32 1.442695, %v1591_v38  ;;  %2701 = vmatpush3.bf16.msra.mxu1 %v1717_v59  ;;  %2702 = vmatprep.mubr.msk.bf16.mxu1 %vm3262_vm0, %v3261_v0  ;;  %v2994_v59 = vld [vmem:[#allocation8 + $0x70] sm:$0xff]  }
 0x417   : > { %2706 = vmatprep.subr.bf16.mxu1 %v3261_v0  ;;  %2603 = vmatprep.subr.bf16.mxu0 %v2994_v59 }
 0x418   : > { %3024 = vpow2.f32 %v1598_v39 }
 0x41a   : > { %v3023_v40 = vpop.eup %3022 }
 0x41b   : > { %v1606_v41 = vsel %vm1575_vm2, %v3023_v40, 0.0  ;;  %v1614_v42 = vpack.c.bf16 %v3023_v40, %v3023_v40 }
 0x41c   : > { %1607 = vadd.xlane.f32.xlu1 %v1606_v41 }
 0x41d   : > { %2703 = vmatmul.mubr.msk.bf16.vlgmr.msra.gmra.mrb[36].mxu1 %vm1575_vm2, %v1614_v42 }
 0x41e   : > { %2707 = vmatpush3.bf16.msra.mxu1 %v3632_v53  ;;  %2708 = vmatprep.mubr.msk.bf16.mxu1 %vm3262_vm0, %v3261_v0  ;;  %v2996_v53 = vld [vmem:[#allocation8 + $0x30] sm:$0xff]  }
 0x41f   : > { %2613 = vmatprep.subr.bf16.mxu1 %v2987_v50  ;;  %2604 = vmatpush3.bf16.msra.mxu0 %v2996_v53  ;;  %v3013_v50 = vld [vmem:[#allocation10 + $0x18] sm:$0xff]  }
 0x420   : > { %2605 = vmatprep.subr.bf16.mxu0 %v2998_v3 }
 0x422   : > { %v3025_v43 = vpop.eup %3024 }
 0x423   : > { %v1609_v44 = vsel %vm1575_vm2, %v3025_v43, 0.0  ;;  %v1615_v45 = vpack.c.bf16 %v3025_v43, %v3025_v43  ;;  %2606 = vmatpush3.bf16.msra.mxu0 %v3000_v5  ;;  %v2553_v5 = vld [vmem:[%s3730_s8] ss:$0 sm:$0xff] }
 0x424   : > { %1610 = vadd.xlane.f32.xlu0 %v1609_v44  ;;  %2712 = vmatprep.subr.bf16.mxu0 %v3261_v0 }
 0x425   : > { %2709 = vmatmul.mubr.msk.bf16.vlgmr.msra.gmra.mrb[40].mxu1 %vm1575_vm2, %v1615_v45 }
 0x426   : > { %2614 = vmatpush3.bf16.msra.mxu1 %v2989_v51  ;;  %v3014_v51 = vld [vmem:[#allocation10 + $0x20] sm:$0xff]  }
 0x427   : > { %2615 = vmatprep.subr.bf16.mxu1 %v2991_v62 }
 0x42a   : > { %2616 = vmatpush3.bf16.msra.mxu1 %v2993_v1 }
 0x42b   : > { %2617 = vmatprep.subr.bf16.mxu1 %v2995_v60 }
 0x42e   : > { %2618 = vmatpush3.bf16.msra.mxu1 %v2997_v2 }
 0x42f   : > { %2619 = vmatprep.subr.bf16.mxu1 %v2999_v4 }
 0x432   : > { %2620 = vmatpush3.bf16.msra.mxu1 %v3001_v6 }
 0x433   : > { %2621 = vmatprep.subr.bf16.mxu1 %v3002_v7 }
 0x436   : > { %2622 = vmatpush3.bf16.msra.mxu1 %v3003_v8 }
 0x437   : > { %2623 = vmatprep.subr.bf16.mxu1 %v3004_v9 }
 0x43a   : > { %2624 = vmatpush3.bf16.msra.mxu1 %v3005_v10 }
 0x43b   : > { %2625 = vmatprep.subr.bf16.mxu1 %v3006_v11 }
 0x43e   : > { %2626 = vmatpush3.bf16.msra.mxu1 %v3007_v12 }
 0x43f   : > { %2627 = vmatprep.subr.bf16.mxu1 %v3008_v13 }
 0x442   : > { %2628 = vmatpush3.bf16.msra.mxu1 %v3009_v14 }
 0x499   : > { %v1602_v15 = vpop.xlane.xlu1 %1601 }
 0x49a   : > { %3026 = vrcp.f32 %v1602_v15 }
 0x4a1   : > { %v1605_v16 = vpop.xlane.xlu0 %1604 }
 0x4a2   : > { %3028 = vrcp.f32 %v1605_v16 }
 0x4a4   : > { %v3027_v21 = vpop.eup %3026 }
 0x4a9   : > { %v1608_v27 = vpop.xlane.xlu1 %1607 }
 0x4aa   : > { %3030 = vrcp.f32 %v1608_v27 }
 0x4ac   : > { %v3029_v22 = vpop.eup %3028 }
 0x4b1   : > { %v1611_v29 = vpop.xlane.xlu0 %1610 }
 0x4b2   : > { %3032 = vrcp.f32 %v1611_v29 }
 0x4b4   : > { %v3031_v39 = vpop.eup %3030 }
 0x4bc   : > { %v3033_v40 = vpop.eup %3032 }
 0x4e0   : > { %v1661_v17 = vpop.f32.mrb[28].mxu1 }
 0x4e1   : > { %v2692_v18 = vpop.f32.mrb[29].mxu1  ;;  %v1809_v23 = vmul.f32 %v3027_v21, %v1661_v17 }
 0x4e2   : > { %v1664_v19 = vpop.f32.mrb[30].mxu1 }
 0x4e3   : > { %v2693_v20 = vpop.f32.mrb[31].mxu1  ;;  %v1813_v33 = vpack.c.bf16 %v1809_v23, %v1809_v23 }
 0x4e8   : > { %v1707_v24 = vpop.f32.mrb[32].mxu1 }
 0x4e9   : > { %v1810_v25 = vmul.f32 %v3029_v22, %v1707_v24  ;;  %v2698_v26 = vpop.f32.mrb[33].mxu1 }
 0x4ea   : > { %v1710_v28 = vpop.f32.mrb[34].mxu1 }
 0x4eb   : > { %v1814_v30 = vpack.c.bf16 %v1810_v25, %v1810_v25  ;;  %v2699_v31 = vpop.f32.mrb[35].mxu1 }
 0x4ed   : > { %2112 = vmatprep.mubr.bf16.mxu0 %v1814_v30 }
 0x4ee   : > { %2113 = vmatmul.mubr.bf16.vlgmr.msra.gmra.mrb[16].mxu0 %v1813_v33 }
 0x4ef   : > { %2713 = vmatpush3.bf16.msra.mxu0 %v3010_v32  ;;  %2728 = vmatprep.mubr.msk.bf16.mxu0 %vm3262_vm0, %v3261_v0 }
 0x4f0   : > { %v1753_v35 = vpop.f32.mrb[36].mxu1  ;;  %2714 = vmatprep.subr.bf16.mxu0 %v3261_v0 }
 0x4f1   : > { %v2704_v36 = vpop.f32.mrb[37].mxu1  ;;  %v1811_v41 = vmul.f32 %v3031_v39, %v1753_v35 }
 0x4f2   : > { %v1756_v37 = vpop.f32.mrb[38].mxu1 }
 0x4f3   : > { %v2705_v38 = vpop.f32.mrb[39].mxu1  ;;  %2715 = vmatpush3.bf16.msra.mxu0 %v3011_v34  ;;  %v1815_v48 = vpack.c.bf16 %v1811_v41, %v1811_v41 }
 0x4f4   : > { %2716 = vmatprep.subr.bf16.mxu0 %v3261_v0 }
 0x4f7   : > { %2717 = vmatpush3.bf16.msra.mxu0 %v3012_v49 }
 0x4f8   : > { %v1799_v42 = vpop.f32.mrb[40].mxu1  ;;  %2718 = vmatprep.subr.bf16.mxu0 %v3261_v0 }
 0x4f9   : > { %v1812_v43 = vmul.f32 %v3033_v40, %v1799_v42  ;;  %v2710_v44 = vpop.f32.mrb[41].mxu1 }
 0x4fa   : > { %v1802_v45 = vpop.f32.mrb[42].mxu1 }
 0x4fb   : > { %v1816_v46 = vpack.c.bf16 %v1812_v43, %v1812_v43  ;;  %v2711_v47 = vpop.f32.mrb[43].mxu1  ;;  %2719 = vmatpush3.bf16.msra.mxu0 %v3013_v50 }
 0x4fc   : > { %2720 = vmatprep.subr.bf16.mxu0 %v3261_v0 }
 0x4fd   : > { %2152 = vmatprep.mubr.bf16.mxu1 %v1816_v46 }
 0x4fe   : > { %2153 = vmatmul.mubr.bf16.vlgmr.msra.gmra.mrb[44].mxu1 %v1815_v48 }
 0x4ff   : > { %2721 = vmatpush3.bf16.msra.mxu0 %v3014_v51 }
 0x500   : > { %2722 = vmatprep.subr.bf16.mxu0 %v3261_v0 }
 0x503   : > { %2723 = vmatpush3.bf16.msra.mxu0 %v3015_v52 }
 0x504   : > { %2724 = vmatprep.subr.bf16.mxu0 %v3261_v0 }
 0x507   : > { %2725 = vmatpush3.bf16.msra.mxu0 %v3016_v54 }
 0x508   : > { %2726 = vmatprep.subr.bf16.mxu0 %v3261_v0 }
 0x50b   : > { %2727 = vmatpush3.bf16.msra.mxu0 %v3017_v55 }
 0x5c1   : > { %v2607_v56 = vpop.f32.mrb[16].mxu0 }
 0x5c2   : > { %v2608_v57 = vpop.f32.mrb[17].mxu0 }
 0x5c3   : > { %v2609_v58 = vadd.f32 %v2608_v57, %v2607_v56  ;;  %v2610_v61 = vpop.f32.mrb[18].mxu0 }
 0x5c4   : > { %v2611_v62 = vpop.f32.mrb[19].mxu0 }
 0x5c5   : > { %v2115_v60 = vadd.f32 %v2609_v58, %v2520_v63 }
 0x5d1   : > { %v2629_v1 = vpop.f32.mrb[44].mxu1 }
 0x5d2   : > { %v2630_v59 = vpop.f32.mrb[45].mxu1 }
 0x5d3   : > { %v2631_v53 = vadd.f32 %v2630_v59, %v2629_v1  ;;  %v2632_v2 = vpop.f32.mrb[46].mxu1 }
 0x5d4   : > { %v2633_v3 = vpop.f32.mrb[47].mxu1 }
 0x5d5   : > { %v2155_v0 = vadd.f32 %v2631_v53, %v2115_v60 }
 0x5d7   : > { %v2160_v4 = vpack.c.bf16 %v2155_v0, %v2155_v0 }
 0x5d9   : > { %2729 = vmatmul.mubr.bf16.vlgmr.msra.gmra.mrb[20].mxu0 %v2160_v4 }
 0x6ac   : > { %v2266_v6 = vpop.f32.mrb[20].mxu0 }
 0x6ad   : > { %v2267_v7 = vadd.f32 %v2553_v5, %v2266_v6  ;;  %v2730_v8 = vpop.f32.mrb[21].mxu0 }
 0x6ae   : > { %v2269_v9 = vpop.f32.mrb[22].mxu0 }
 0x6af   : > { %2272 = vst [vmem:[%s405_s9] sm:$0xff] %v2267_v7  ;;  %v2731_v10 = vpop.f32.mrb[23].mxu0 }
 0x6b0   : > { %3189 = shalt.err (!%p3186_p0)
}
 0x6b1   : > { %s3190_s1 = scalar_lea.hbm %s3678_s22, 128  ;;  %s3194_s26 = scalar_lea.hbm %s3757_s19, 256 }
 0x6b2   : > { %p3191_p2 = scmp.ne.s32.totalorder %s3678_s22, %s3190_s1  ;;  %p3195_p10 = scmp.lt.u32.totalorder %s3678_s22, %s3757_s19 }
 0x6b3   : > { %p3196_p11 = scmp.lt.u32.totalorder %s3194_s26, %s3190_s1  ;;  %p3198_p6 = scmp.lt.u32.totalorder %s3190_s1, %s3678_s22 }
 0x6b4   : > { %p3192_p8 = pnand %p3191_p2, %p3758_p5 }
 0x6b5   : > { %p3197_p1 = por %p3196_p11, %p3195_p10 }
 0x6b6   : > { %p3193_p4 = pneg %p3192_p8 }
 0x6b7   : > { %p3199_p7 = por %p3198_p6, %p3197_p1 }
 0x6b9   : > { %p3200_p9 = pnand %p3199_p7, %p3193_p4 }
 0x6bb   : > { %3203 = shalt.err (!%p3200_p9)
}
 0x6bc   : > { %2750 = dma.vmem_to_hbm [thread:$0]  (%p3758_p5), %s3680_s16, 128, %s3678_s22, %s2274_s15  }
 0x6bd PF: > { %s2299_s17 = sand.u32 1, %s3238_s30   ;;  %p3759_p12 = scmp.ne.s32.totalorder %s3750_s13, 0 }
 0x6be   : > { %p3760_p3 = scmp.ge.s32.totalorder %s3250_s12, 2  ;;  %s2300_s23 = scalar_lea.sflag [#allocation4], %s2299_s17 }
 0x6c0   : > { %p2770_p13 = pnand %p3760_p3, %p3759_p12 }
 0x6c2   : > { %3233 = dma.done.wait (!%p2770_p13), %s2300_s23, 128  }
 0x6c3   : > { %3235 = vsyncadd (!%p2770_p13), %s2300_s23, 4294967168  ;;  %p24_p0 = scmp.ge.s32.totalorder %s3464_s27, 4   ;;  %s3761_s30 = smov %s3242_s10 }
 0x6c4   : > { %s3762_s10 = smov %s3246_s11  ;;  %s3763_s11 = smov %s3475_s24 }
 0x6c5   : > { %s3764_s12 = smov %s3464_s27  ;;  %26 = sbr.rel (!%p24_p0) target bundleno = 10 (0xa), region = 117 }
 0x6cc   :  { %2305 = vsyncpa [#allocation3], 1 }
 0x6cd   :  { %2307 = vsyncpa [#allocation3 + $0x1], 1 }
 0x6ce   :  { %2308 = vsyncpa [#allocation6], 1 }
 0x6cf   :  { %2309 = vsyncpa [#allocation9], 1 }
 0x6d0   :  { %2310 = vsyncpa [#allocation4], 1 }
 0x6d1   :  { %2312 = vsyncpa [#allocation4 + $0x1], 1 }

</bundles_post_ra>
